<compile_context>
chip_gen: v7x
topology: tpu7x:2x2x1
jax: 0.10.0
libtpu: 0.0.40
codegen_flags: <defaults>
</compile_context>

<pallas_src>
import jax
import jax.numpy as jnp
from jax.experimental import pallas as pl
from jax.experimental.pallas import tpu as pltpu


def _round_up(v, m):
    return ((v + m - 1) // m) * m


def _bilinear_weights(offset, size, out_size, full):
    """(cutn, out_size, full) crop-then-bilinear-resize matrices, built on device.

    offset, size: int32 (cutn,) arrays. align_corners=False sampling.
    """
    size_f = size.astype(jnp.float32)[:, None]                          # (N, 1)
    i = jnp.arange(out_size, dtype=jnp.float32)[None, :]                # (1, S)
    src = jnp.clip((i + 0.5) * size_f / out_size - 0.5, 0.0, size_f - 1.0)
    lo = jnp.minimum(jnp.floor(src).astype(jnp.int32), size[:, None] - 1)
    hi = jnp.minimum(lo + 1, size[:, None] - 1)
    frac = src - lo.astype(jnp.float32)
    cols = jnp.arange(full, dtype=jnp.int32)[None, None, :]             # (1, 1, full)
    oh_lo = (cols == (offset[:, None] + lo)[:, :, None]).astype(jnp.float32)
    oh_hi = (cols == (offset[:, None] + hi)[:, :, None]).astype(jnp.float32)
    return (1.0 - frac)[:, :, None] * oh_lo + frac[:, :, None] * oh_hi  # (N, S, full)


def _make_cutouts_kernel(x_ref, wyt_ref, wx_ref, o_ref, t_ref):
    # x_ref  : (B*C*Wpad, H)       bf16  transposed planes, resident across grid
    # wyt_ref: (1, H, Spad)        bf16  row-resample matrix (transposed)
    # wx_ref : (1, Spad, Wpad)     bf16  column-resample matrix
    # o_ref  : (1, Spad, BC*Spad)  bf16  lane-dense output slab
    # t_ref  : (B*C*Wpad, Spad)    bf16  scratch: row-resampled planes
    Spad = wyt_ref.shape[2]
    Wpad = wx_ref.shape[2]
    BC = t_ref.shape[0] // Wpad

    # Row resample of all B*C planes in ONE large MXU matmul (f32 accumulate):
    #   (BC*Wpad, H) @ (H, Spad) -> (BC*Wpad, Spad)
    t_ref[...] = jnp.dot(x_ref[...], wyt_ref[0],
                         preferred_element_type=jnp.float32).astype(t_ref.dtype)

    # Column resample per plane: (Spad, Wpad) @ (Wpad, Spad) -> (Spad, Spad).
    # Row slice of t starts at bc*Wpad (sublane aligned: Wpad % 8 == 0); output
    # column slice starts at bc*Spad (lane aligned: Spad % 128 == 0), so both
    # are plain vld/vst with no masking, and the f32 temporary stays bounded to
    # one (Spad, Spad) block.  Per-chunk ref loads inside the loop bound live
    # ranges.
    for bc in range(BC):
        y = jnp.dot(wx_ref[0], t_ref[bc * Wpad:(bc + 1) * Wpad, :],
                    preferred_element_type=jnp.float32)
        o_ref[0, :, bc * Spad:(bc + 1) * Spad] = (
            jnp.clip(y, 0.0, 1.0).astype(o_ref.dtype))


class MakeCutouts:
    """Pallas/TPU port of the PyTorch MakeCutouts module (forward only)."""

    def __init__(self, cut_size, cutn, cut_pow=1.0):
        self.cut_size = int(cut_size)
        self.cutn = int(cutn)
        self.cut_pow = float(cut_pow)
        try:
            self._vmem_cap = int(getattr(pltpu.get_tpu_info(),
                                         "vmem_capacity_bytes", 64 << 20))
        except Exception:
            self._vmem_cap = 64 << 20
        self._forward_jit = jax.jit(self._forward)

    def __call__(self, x, key):
        return self._forward_jit(x, key)

    def _forward(self, x, key):
        B, C, sideY, sideX = x.shape
        S = self.cut_size
        BC = B * C
        Spad = _round_up(S, 128)      # lane-dense / MXU-filled output tiles
        Wpad = _round_up(sideX, 8)    # sublane-aligned per-plane row slices
        max_size = min(sideX, sideY)
        min_size = min(sideX, sideY, S)

        # Draw all crop parameters on device (same formulas as the torch module;
        # distribution matches, RNG stream does not).
        k_size, k_ox, k_oy = jax.random.split(key, 3)
        u = jax.random.uniform(k_size, (self.cutn,), dtype=jnp.float32)
        size = jnp.floor(u ** self.cut_pow * (max_size - min_size)
                         + min_size).astype(jnp.int32)
        size = jnp.clip(size, 1, max_size)
        ux = jax.random.uniform(k_ox, (self.cutn,), dtype=jnp.float32)
        uy = jax.random.uniform(k_oy, (self.cutn,), dtype=jnp.float32)
        offsetx = jnp.clip(jnp.floor(
            ux * (sideX - size + 1).astype(jnp.float32)).astype(jnp.int32),
            0, sideX - size)
        offsety = jnp.clip(jnp.floor(
            uy * (sideY - size + 1).astype(jnp.float32)).astype(jnp.int32),
            0, sideY - size)

        # Per-cutout interpolation matrices, zero-padded to the padded tile
        # sizes (padded rows/cols contribute zeros that are trimmed later).
        wy = _bilinear_weights(offsety, size, S, sideY)           # (cutn, S, H)
        wx = _bilinear_weights(offsetx, size, S, sideX)           # (cutn, S, W)
        wy = jnp.pad(wy, ((0, 0), (0, Spad - S), (0, 0)))
        wx = jnp.pad(wx, ((0, 0), (0, Spad - S), (0, Wpad - sideX)))
        wyt = jnp.transpose(wy, (0, 2, 1)).astype(jnp.bfloat16)   # (cutn, H, Spad)
        wx = wx.astype(jnp.bfloat16)                              # (cutn, Spad, Wpad)

        # Present each plane transposed and stacked along rows: (BC*Wpad, H),
        # bf16.  One wrapper-side transpose/cast, amortized over all cutouts.
        x_t = jnp.transpose(x, (0, 1, 3, 2))                      # (B, C, W, H)
        x_t = jnp.pad(x_t, ((0, 0), (0, 0), (0, Wpad - sideX), (0, 0)))
        x_t = x_t.reshape(BC * Wpad, sideY).astype(jnp.bfloat16)

        # VMEM budget audit (bytes): single-buffered resident image + double-
        # buffered per-cutout operands/output + bf16 intermediate scratch + one
        # (Spad, Spad) f32 matmul temporary.  Clamp to device capacity.
        img_b = BC * Wpad * sideY * 2
        wyt_b = sideY * Spad * 2
        wx_b = Spad * Wpad * 2
        out_b = Spad * BC * Spad * 2
        t_b = BC * Wpad * Spad * 2
        tmp_b = Spad * Spad * 4
        need = img_b + 2 * (wyt_b + wx_b + out_b) + t_b + tmp_b
        vmem_limit = max(4 << 20, min(int(1.25 * need) + (2 << 20),
                                      int(0.9 * self._vmem_cap)))

        flops = self.cutn * 2 * BC * Wpad * Spad * (sideY + Spad)
        bytes_accessed = img_b + self.cutn * (wyt_b + wx_b + out_b)

        out = pl.pallas_call(
            _make_cutouts_kernel,
            out_shape=jax.ShapeDtypeStruct((self.cutn, Spad, BC * Spad),
                                           jnp.bfloat16),
            grid_spec=pltpu.PrefetchScalarGridSpec(
                num_scalar_prefetch=0,
                grid=(self.cutn,),
                in_specs=[
                    # Resident image: constant index map -> fetched once,
                    # single-buffered.
                    pl.BlockSpec((BC * Wpad, sideY), lambda n: (0, 0),
                                 pipeline_mode=pl.Buffered(1)),
                    pl.BlockSpec((1, sideY, Spad), lambda n: (n, 0, 0)),
                    pl.BlockSpec((1, Spad, Wpad), lambda n: (n, 0, 0)),
                ],
                out_specs=pl.BlockSpec((1, Spad, BC * Spad),
                                       lambda n: (n, 0, 0)),
                scratch_shapes=[
                    pltpu.VMEM((BC * Wpad, Spad), jnp.bfloat16),
                ],
            ),
            compiler_params=pltpu.CompilerParams(
                dimension_semantics=("parallel",),
                vmem_limit_bytes=vmem_limit,
            ),
            cost_estimate=pl.CostEstimate(
                flops=int(flops),
                transcendentals=0,
                bytes_accessed=int(bytes_accessed),
            ),
        )(x_t, wyt, wx)

        # out[n, j, (b*C + c)*Spad + i] -> (cutn*B, C, S, S), torch.cat ordering
        # (cutout-major, then batch).  Trim padding; pure layout plumbing.
        out = out.reshape(self.cutn, Spad, B, C, Spad)[:, :S, :, :, :S]
        out = jnp.transpose(out, (0, 2, 3, 4, 1))                 # [n, b, c, i, j]
        return out.reshape(self.cutn * B, C, S, S).astype(x.dtype)


if __name__ == "__main__":
    key = jax.random.PRNGKey(0)
    k_in, k_cut = jax.random.split(key)

    B, C, H, W = 2, 4, 16, 16
    cut_size, cutn, cut_pow = 8, 4, 1.0

    # Values slightly outside [0, 1] so the clamp actually does something.
    x = jax.random.uniform(k_in, (B, C, H, W), dtype=jnp.float32,
                           minval=-0.2, maxval=1.2)

    make_cutouts = MakeCutouts(cut_size, cutn, cut_pow)
    out = make_cutouts(x, k_cut)
    out = jax.block_until_ready(out)

    assert out.shape == (cutn * B, C, cut_size, cut_size)
    assert float(out.min()) >= 0.0 and float(out.max()) <= 1.0
    print("KERNEL_OK")
</pallas_src>

<mosaic_0001>
module attributes {stable_mosaic.version = 11 : i64} {
  func.func @_make_cutouts_kernel(%arg0: i32, %arg1: memref<128x16xbf16, #tpu.memory_space<vmem>>, %arg2: memref<1x16x128xbf16, #tpu.memory_space<vmem>>, %arg3: memref<1x128x16xbf16, #tpu.memory_space<vmem>>, %arg4: memref<1x128x1024xbf16, #tpu.memory_space<vmem>>, %arg5: memref<128x128xbf16, #tpu.memory_space<vmem>>) attributes {dimension_semantics = [#tpu.dimension_semantics<parallel>], iteration_bounds = array<i64: 4>, scalar_prefetch = 0 : i64, scratch_operands = 1 : i64, tpu.core_type = #tpu.core_type<tc>, window_params = [{pipeline_mode = #tpu.pipeline_mode<synchronous>, transform_indices = @transform_0, window_bounds = array<i64: 128, 16>}, {transform_indices = @transform_1, window_bounds = array<i64: 1, 16, 128>}, {transform_indices = @transform_2, window_bounds = array<i64: 1, 128, 16>}, {transform_indices = @transform_3, window_bounds = array<i64: 1, 128, 1024>}]} {
    %c0 = arith.constant 0 : index
    %c0_0 = arith.constant 0 : index
    %0 = vector.load %arg1[%c0, %c0_0] : memref<128x16xbf16, #tpu.memory_space<vmem>>, vector<128x16xbf16>
    %c0_1 = arith.constant 0 : index
    %c0_2 = arith.constant 0 : index
    %c0_3 = arith.constant 0 : index
    %1 = vector.load %arg2[%c0_1, %c0_2, %c0_3] : memref<1x16x128xbf16, #tpu.memory_space<vmem>>, vector<1x16x128xbf16>
    %2 = vector.shape_cast %1 : vector<1x16x128xbf16> to vector<16x128xbf16>
    %cst = arith.constant dense<0.000000e+00> : vector<128x128xf32>
    %3 = tpu.matmul %0, %2, %cst {dimension_numbers = #tpu.dot_dimension_numbers<[1], [0], [0], [1], [0, 0, 1, 1], [], []>} : vector<128x16xbf16>, vector<16x128xbf16>, vector<128x128xf32> -> vector<128x128xf32>
    %4 = arith.truncf %3 : vector<128x128xf32> to vector<128x128xbf16>
    %c0_4 = arith.constant 0 : index
    %c0_5 = arith.constant 0 : index
    %5 = vector.load %arg5[%c0_4, %c0_5] : memref<128x128xbf16, #tpu.memory_space<vmem>>, vector<128x128xbf16>
    tpu.vector_store %arg5[%c0_4, %c0_5], %4 {strides = array<i32>} : memref<128x128xbf16, #tpu.memory_space<vmem>>, vector<128x128xbf16>,
    %c0_6 = arith.constant 0 : index
    %c0_7 = arith.constant 0 : index
    %c0_8 = arith.constant 0 : index
    %6 = vector.load %arg3[%c0_6, %c0_7, %c0_8] : memref<1x128x16xbf16, #tpu.memory_space<vmem>>, vector<1x128x16xbf16>
    %7 = vector.shape_cast %6 : vector<1x128x16xbf16> to vector<128x16xbf16>
    %c0_9 = arith.constant 0 : index
    %c0_10 = arith.constant 0 : index
    %8 = vector.load %arg5[%c0_9, %c0_10] : memref<128x128xbf16, #tpu.memory_space<vmem>>, vector<16x128xbf16>
    %cst_11 = arith.constant dense<0.000000e+00> : vector<128x128xf32>
    %9 = tpu.matmul %7, %8, %cst_11 {dimension_numbers = #tpu.dot_dimension_numbers<[1], [0], [0], [1], [0, 0, 1, 1], [], []>} : vector<128x16xbf16>, vector<16x128xbf16>, vector<128x128xf32> -> vector<128x128xf32>
    %cst_12 = arith.constant 0.000000e+00 : f32
    %cst_13 = arith.constant 1.000000e+00 : f32
    %10 = vector.broadcast %cst_12 : f32 to vector<128x128xf32>
    %11 = arith.maximumf %10, %9 : vector<128x128xf32>
    %12 = vector.broadcast %cst_13 : f32 to vector<128x128xf32>
    %13 = arith.minimumf %12, %11 : vector<128x128xf32>
    %14 = arith.truncf %13 : vector<128x128xf32> to vector<128x128xbf16>
    %c0_14 = arith.constant 0 : index
    %c0_15 = arith.constant 0 : index
    %c0_16 = arith.constant 0 : index
    %15 = vector.load %arg4[%c0_14, %c0_15, %c0_16] : memref<1x128x1024xbf16, #tpu.memory_space<vmem>>, vector<1x128x128xbf16>
    %16 = vector.shape_cast %15 : vector<1x128x128xbf16> to vector<128x128xbf16>
    %17 = vector.shape_cast %14 : vector<128x128xbf16> to vector<1x128x128xbf16>
    tpu.vector_store %arg4[%c0_14, %c0_15, %c0_16], %17 {strides = array<i32>} : memref<1x128x1024xbf16, #tpu.memory_space<vmem>>, vector<1x128x128xbf16>,
    %c0_17 = arith.constant 0 : index
    %c0_18 = arith.constant 0 : index
    %c0_19 = arith.constant 0 : index
    %18 = vector.load %arg3[%c0_17, %c0_18, %c0_19] : memref<1x128x16xbf16, #tpu.memory_space<vmem>>, vector<1x128x16xbf16>
    %19 = vector.shape_cast %18 : vector<1x128x16xbf16> to vector<128x16xbf16>
    %c16 = arith.constant 16 : index
    %c0_20 = arith.constant 0 : index
    %20 = vector.load %arg5[%c16, %c0_20] : memref<128x128xbf16, #tpu.memory_space<vmem>>, vector<16x128xbf16>
    %cst_21 = arith.constant dense<0.000000e+00> : vector<128x128xf32>
    %21 = tpu.matmul %19, %20, %cst_21 {dimension_numbers = #tpu.dot_dimension_numbers<[1], [0], [0], [1], [0, 0, 1, 1], [], []>} : vector<128x16xbf16>, vector<16x128xbf16>, vector<128x128xf32> -> vector<128x128xf32>
    %cst_22 = arith.constant 0.000000e+00 : f32
    %cst_23 = arith.constant 1.000000e+00 : f32
    %22 = vector.broadcast %cst_22 : f32 to vector<128x128xf32>
    %23 = arith.maximumf %22, %21 : vector<128x128xf32>
    %24 = vector.broadcast %cst_23 : f32 to vector<128x128xf32>
    %25 = arith.minimumf %24, %23 : vector<128x128xf32>
    %26 = arith.truncf %25 : vector<128x128xf32> to vector<128x128xbf16>
    %c0_24 = arith.constant 0 : index
    %c0_25 = arith.constant 0 : index
    %c128 = arith.constant 128 : index
    %27 = vector.load %arg4[%c0_24, %c0_25, %c128] : memref<1x128x1024xbf16, #tpu.memory_space<vmem>>, vector<1x128x128xbf16>
    %28 = vector.shape_cast %27 : vector<1x128x128xbf16> to vector<128x128xbf16>
    %29 = vector.shape_cast %26 : vector<128x128xbf16> to vector<1x128x128xbf16>
    tpu.vector_store %arg4[%c0_24, %c0_25, %c128], %29 {strides = array<i32>} : memref<1x128x1024xbf16, #tpu.memory_space<vmem>>, vector<1x128x128xbf16>,
    %c0_26 = arith.constant 0 : index
    %c0_27 = arith.constant 0 : index
    %c0_28 = arith.constant 0 : index
    %30 = vector.load %arg3[%c0_26, %c0_27, %c0_28] : memref<1x128x16xbf16, #tpu.memory_space<vmem>>, vector<1x128x16xbf16>
    %31 = vector.shape_cast %30 : vector<1x128x16xbf16> to vector<128x16xbf16>
    %c32 = arith.constant 32 : index
    %c0_29 = arith.constant 0 : index
    %32 = vector.load %arg5[%c32, %c0_29] : memref<128x128xbf16, #tpu.memory_space<vmem>>, vector<16x128xbf16>
    %cst_30 = arith.constant dense<0.000000e+00> : vector<128x128xf32>
    %33 = tpu.matmul %31, %32, %cst_30 {dimension_numbers = #tpu.dot_dimension_numbers<[1], [0], [0], [1], [0, 0, 1, 1], [], []>} : vector<128x16xbf16>, vector<16x128xbf16>, vector<128x128xf32> -> vector<128x128xf32>
    %cst_31 = arith.constant 0.000000e+00 : f32
    %cst_32 = arith.constant 1.000000e+00 : f32
    %34 = vector.broadcast %cst_31 : f32 to vector<128x128xf32>
    %35 = arith.maximumf %34, %33 : vector<128x128xf32>
    %36 = vector.broadcast %cst_32 : f32 to vector<128x128xf32>
    %37 = arith.minimumf %36, %35 : vector<128x128xf32>
    %38 = arith.truncf %37 : vector<128x128xf32> to vector<128x128xbf16>
    %c0_33 = arith.constant 0 : index
    %c0_34 = arith.constant 0 : index
    %c256 = arith.constant 256 : index
    %39 = vector.load %arg4[%c0_33, %c0_34, %c256] : memref<1x128x1024xbf16, #tpu.memory_space<vmem>>, vector<1x128x128xbf16>
    %40 = vector.shape_cast %39 : vector<1x128x128xbf16> to vector<128x128xbf16>
    %41 = vector.shape_cast %38 : vector<128x128xbf16> to vector<1x128x128xbf16>
    tpu.vector_store %arg4[%c0_33, %c0_34, %c256], %41 {strides = array<i32>} : memref<1x128x1024xbf16, #tpu.memory_space<vmem>>, vector<1x128x128xbf16>,
    %c0_35 = arith.constant 0 : index
    %c0_36 = arith.constant 0 : index
    %c0_37 = arith.constant 0 : index
    %42 = vector.load %arg3[%c0_35, %c0_36, %c0_37] : memref<1x128x16xbf16, #tpu.memory_space<vmem>>, vector<1x128x16xbf16>
    %43 = vector.shape_cast %42 : vector<1x128x16xbf16> to vector<128x16xbf16>
    %c48 = arith.constant 48 : index
    %c0_38 = arith.constant 0 : index
    %44 = vector.load %arg5[%c48, %c0_38] : memref<128x128xbf16, #tpu.memory_space<vmem>>, vector<16x128xbf16>
    %cst_39 = arith.constant dense<0.000000e+00> : vector<128x128xf32>
    %45 = tpu.matmul %43, %44, %cst_39 {dimension_numbers = #tpu.dot_dimension_numbers<[1], [0], [0], [1], [0, 0, 1, 1], [], []>} : vector<128x16xbf16>, vector<16x128xbf16>, vector<128x128xf32> -> vector<128x128xf32>
    %cst_40 = arith.constant 0.000000e+00 : f32
    %cst_41 = arith.constant 1.000000e+00 : f32
    %46 = vector.broadcast %cst_40 : f32 to vector<128x128xf32>
    %47 = arith.maximumf %46, %45 : vector<128x128xf32>
    %48 = vector.broadcast %cst_41 : f32 to vector<128x128xf32>
    %49 = arith.minimumf %48, %47 : vector<128x128xf32>
    %50 = arith.truncf %49 : vector<128x128xf32> to vector<128x128xbf16>
    %c0_42 = arith.constant 0 : index
    %c0_43 = arith.constant 0 : index
    %c384 = arith.constant 384 : index
    %51 = vector.load %arg4[%c0_42, %c0_43, %c384] : memref<1x128x1024xbf16, #tpu.memory_space<vmem>>, vector<1x128x128xbf16>
    %52 = vector.shape_cast %51 : vector<1x128x128xbf16> to vector<128x128xbf16>
    %53 = vector.shape_cast %50 : vector<128x128xbf16> to vector<1x128x128xbf16>
    tpu.vector_store %arg4[%c0_42, %c0_43, %c384], %53 {strides = array<i32>} : memref<1x128x1024xbf16, #tpu.memory_space<vmem>>, vector<1x128x128xbf16>,
    %c0_44 = arith.constant 0 : index
    %c0_45 = arith.constant 0 : index
    %c0_46 = arith.constant 0 : index
    %54 = vector.load %arg3[%c0_44, %c0_45, %c0_46] : memref<1x128x16xbf16, #tpu.memory_space<vmem>>, vector<1x128x16xbf16>
    %55 = vector.shape_cast %54 : vector<1x128x16xbf16> to vector<128x16xbf16>
    %c64 = arith.constant 64 : index
    %c0_47 = arith.constant 0 : index
    %56 = vector.load %arg5[%c64, %c0_47] : memref<128x128xbf16, #tpu.memory_space<vmem>>, vector<16x128xbf16>
    %cst_48 = arith.constant dense<0.000000e+00> : vector<128x128xf32>
    %57 = tpu.matmul %55, %56, %cst_48 {dimension_numbers = #tpu.dot_dimension_numbers<[1], [0], [0], [1], [0, 0, 1, 1], [], []>} : vector<128x16xbf16>, vector<16x128xbf16>, vector<128x128xf32> -> vector<128x128xf32>
    %cst_49 = arith.constant 0.000000e+00 : f32
    %cst_50 = arith.constant 1.000000e+00 : f32
    %58 = vector.broadcast %cst_49 : f32 to vector<128x128xf32>
    %59 = arith.maximumf %58, %57 : vector<128x128xf32>
    %60 = vector.broadcast %cst_50 : f32 to vector<128x128xf32>
    %61 = arith.minimumf %60, %59 : vector<128x128xf32>
    %62 = arith.truncf %61 : vector<128x128xf32> to vector<128x128xbf16>
    %c0_51 = arith.constant 0 : index
    %c0_52 = arith.constant 0 : index
    %c512 = arith.constant 512 : index
    %63 = vector.load %arg4[%c0_51, %c0_52, %c512] : memref<1x128x1024xbf16, #tpu.memory_space<vmem>>, vector<1x128x128xbf16>
    %64 = vector.shape_cast %63 : vector<1x128x128xbf16> to vector<128x128xbf16>
    %65 = vector.shape_cast %62 : vector<128x128xbf16> to vector<1x128x128xbf16>
    tpu.vector_store %arg4[%c0_51, %c0_52, %c512], %65 {strides = array<i32>} : memref<1x128x1024xbf16, #tpu.memory_space<vmem>>, vector<1x128x128xbf16>,
    %c0_53 = arith.constant 0 : index
    %c0_54 = arith.constant 0 : index
    %c0_55 = arith.constant 0 : index
    %66 = vector.load %arg3[%c0_53, %c0_54, %c0_55] : memref<1x128x16xbf16, #tpu.memory_space<vmem>>, vector<1x128x16xbf16>
    %67 = vector.shape_cast %66 : vector<1x128x16xbf16> to vector<128x16xbf16>
    %c80 = arith.constant 80 : index
    %c0_56 = arith.constant 0 : index
    %68 = vector.load %arg5[%c80, %c0_56] : memref<128x128xbf16, #tpu.memory_space<vmem>>, vector<16x128xbf16>
    %cst_57 = arith.constant dense<0.000000e+00> : vector<128x128xf32>
    %69 = tpu.matmul %67, %68, %cst_57 {dimension_numbers = #tpu.dot_dimension_numbers<[1], [0], [0], [1], [0, 0, 1, 1], [], []>} : vector<128x16xbf16>, vector<16x128xbf16>, vector<128x128xf32> -> vector<128x128xf32>
    %cst_58 = arith.constant 0.000000e+00 : f32
    %cst_59 = arith.constant 1.000000e+00 : f32
    %70 = vector.broadcast %cst_58 : f32 to vector<128x128xf32>
    %71 = arith.maximumf %70, %69 : vector<128x128xf32>
    %72 = vector.broadcast %cst_59 : f32 to vector<128x128xf32>
    %73 = arith.minimumf %72, %71 : vector<128x128xf32>
    %74 = arith.truncf %73 : vector<128x128xf32> to vector<128x128xbf16>
    %c0_60 = arith.constant 0 : index
    %c0_61 = arith.constant 0 : index
    %c640 = arith.constant 640 : index
    %75 = vector.load %arg4[%c0_60, %c0_61, %c640] : memref<1x128x1024xbf16, #tpu.memory_space<vmem>>, vector<1x128x128xbf16>
    %76 = vector.shape_cast %75 : vector<1x128x128xbf16> to vector<128x128xbf16>
    %77 = vector.shape_cast %74 : vector<128x128xbf16> to vector<1x128x128xbf16>
    tpu.vector_store %arg4[%c0_60, %c0_61, %c640], %77 {strides = array<i32>} : memref<1x128x1024xbf16, #tpu.memory_space<vmem>>, vector<1x128x128xbf16>,
    %c0_62 = arith.constant 0 : index
    %c0_63 = arith.constant 0 : index
    %c0_64 = arith.constant 0 : index
    %78 = vector.load %arg3[%c0_62, %c0_63, %c0_64] : memref<1x128x16xbf16, #tpu.memory_space<vmem>>, vector<1x128x16xbf16>
    %79 = vector.shape_cast %78 : vector<1x128x16xbf16> to vector<128x16xbf16>
    %c96 = arith.constant 96 : index
    %c0_65 = arith.constant 0 : index
    %80 = vector.load %arg5[%c96, %c0_65] : memref<128x128xbf16, #tpu.memory_space<vmem>>, vector<16x128xbf16>
    %cst_66 = arith.constant dense<0.000000e+00> : vector<128x128xf32>
    %81 = tpu.matmul %79, %80, %cst_66 {dimension_numbers = #tpu.dot_dimension_numbers<[1], [0], [0], [1], [0, 0, 1, 1], [], []>} : vector<128x16xbf16>, vector<16x128xbf16>, vector<128x128xf32> -> vector<128x128xf32>
    %cst_67 = arith.constant 0.000000e+00 : f32
    %cst_68 = arith.constant 1.000000e+00 : f32
    %82 = vector.broadcast %cst_67 : f32 to vector<128x128xf32>
    %83 = arith.maximumf %82, %81 : vector<128x128xf32>
    %84 = vector.broadcast %cst_68 : f32 to vector<128x128xf32>
    %85 = arith.minimumf %84, %83 : vector<128x128xf32>
    %86 = arith.truncf %85 : vector<128x128xf32> to vector<128x128xbf16>
    %c0_69 = arith.constant 0 : index
    %c0_70 = arith.constant 0 : index
    %c768 = arith.constant 768 : index
    %87 = vector.load %arg4[%c0_69, %c0_70, %c768] : memref<1x128x1024xbf16, #tpu.memory_space<vmem>>, vector<1x128x128xbf16>
    %88 = vector.shape_cast %87 : vector<1x128x128xbf16> to vector<128x128xbf16>
    %89 = vector.shape_cast %86 : vector<128x128xbf16> to vector<1x128x128xbf16>
    tpu.vector_store %arg4[%c0_69, %c0_70, %c768], %89 {strides = array<i32>} : memref<1x128x1024xbf16, #tpu.memory_space<vmem>>, vector<1x128x128xbf16>,
    %c0_71 = arith.constant 0 : index
    %c0_72 = arith.constant 0 : index
    %c0_73 = arith.constant 0 : index
    %90 = vector.load %arg3[%c0_71, %c0_72, %c0_73] : memref<1x128x16xbf16, #tpu.memory_space<vmem>>, vector<1x128x16xbf16>
    %91 = vector.shape_cast %90 : vector<1x128x16xbf16> to vector<128x16xbf16>
    %c112 = arith.constant 112 : index
    %c0_74 = arith.constant 0 : index
    %92 = vector.load %arg5[%c112, %c0_74] : memref<128x128xbf16, #tpu.memory_space<vmem>>, vector<16x128xbf16>
    %cst_75 = arith.constant dense<0.000000e+00> : vector<128x128xf32>
    %93 = tpu.matmul %91, %92, %cst_75 {dimension_numbers = #tpu.dot_dimension_numbers<[1], [0], [0], [1], [0, 0, 1, 1], [], []>} : vector<128x16xbf16>, vector<16x128xbf16>, vector<128x128xf32> -> vector<128x128xf32>
    %cst_76 = arith.constant 0.000000e+00 : f32
    %cst_77 = arith.constant 1.000000e+00 : f32
    %94 = vector.broadcast %cst_76 : f32 to vector<128x128xf32>
    %95 = arith.maximumf %94, %93 : vector<128x128xf32>
    %96 = vector.broadcast %cst_77 : f32 to vector<128x128xf32>
    %97 = arith.minimumf %96, %95 : vector<128x128xf32>
    %98 = arith.truncf %97 : vector<128x128xf32> to vector<128x128xbf16>
    %c0_78 = arith.constant 0 : index
    %c0_79 = arith.constant 0 : index
    %c896 = arith.constant 896 : index
    %99 = vector.load %arg4[%c0_78, %c0_79, %c896] : memref<1x128x1024xbf16, #tpu.memory_space<vmem>>, vector<1x128x128xbf16>
    %100 = vector.shape_cast %99 : vector<1x128x128xbf16> to vector<128x128xbf16>
    %101 = vector.shape_cast %98 : vector<128x128xbf16> to vector<1x128x128xbf16>
    tpu.vector_store %arg4[%c0_78, %c0_79, %c896], %101 {strides = array<i32>} : memref<1x128x1024xbf16, #tpu.memory_space<vmem>>, vector<1x128x128xbf16>,
    return
  }
  func.func @transform_0(%arg0: i32) -> (i32, i32) {
    %c0_i32 = arith.constant 0 : i32
    %c0_i32_0 = arith.constant 0 : i32
    %c0_i32_1 = arith.constant 0 : i32
    return %c0_i32, %c0_i32_0 : i32, i32
  }
  func.func @transform_1(%arg0: i32) -> (i32, i32, i32) {
    %c0_i32 = arith.constant 0 : i32
    %c0_i32_0 = arith.constant 0 : i32
    %c0_i32_1 = arith.constant 0 : i32
    return %arg0, %c0_i32, %c0_i32_0 : i32, i32, i32
  }
  func.func @transform_2(%arg0: i32) -> (i32, i32, i32) {
    %c0_i32 = arith.constant 0 : i32
    %c0_i32_0 = arith.constant 0 : i32
    %c0_i32_1 = arith.constant 0 : i32
    return %arg0, %c0_i32, %c0_i32_0 : i32, i32, i32
  }
  func.func @transform_3(%arg0: i32) -> (i32, i32, i32) {
    %c0_i32 = arith.constant 0 : i32
    %c0_i32_0 = arith.constant 0 : i32
    %c0_i32_1 = arith.constant 0 : i32
    return %arg0, %c0_i32, %c0_i32_0 : i32, i32, i32
  }
}

</mosaic_0001>

<bundles_post_ra>
// kernel: _forward.1
= control target key start
LH: loop header
LB: loop body
LE: loop exit
PB: predicated region body
PF: predicated region fallthrough
CT: control target
= control target key end

     0   :  { %s3552_s12 = smov 0   ;;  %s3881_s0 = inlined_call_operand.vmem [shape: bf16[128,16], index: 0, kind: input, shape index: {}]   ;;  %s3882_s1 = inlined_call_operand.vmem [shape: bf16[4,16,128], index: 1, kind: input, shape index: {}]   ;;  %s3883_s2 = inlined_call_operand.vmem [shape: bf16[4,128,16], index: 2, kind: input, shape index: {}]   ;;  %s3884_s3 = inlined_call_operand.vmem [shape: bf16[4,128,1024], index: 3, kind: output, shape index: {}]  }
   0x1 LB: > { %s2781_s13 = sadd.s32 4294967295, %s3530_s12   ;;  %p2785_p0 = scmp.ge.s32.totalorder %s3530_s12, 1  ;;  %s3530_s12 = sphi %s3552_s12, %s13_s12  }
   0x2   : > { %p147_p1 = scmp.lt.s32.totalorder %s3530_s12, 5 }
   0x4   : > { %p148_p2 = pnand %p2785_p0, %p147_p1 }
   0x5   : > { %p176_p3 = scmp.lt.s32.totalorder (!%p148_p2), %s2781_s13, 3  ;;  %v3452_v0 = vld [vmem:[%s3881_s0] sm:$0xff] (!%p148_p2)   ;;  %vm256_vm0 = vcmask (!%p148_p2), 130048   ;;  %v3453_v3 = vld [vmem:[%s3881_s0 + $0x8] sm:$0xff] (!%p148_p2)   ;;  %v3454_v4 = vld [vmem:[%s3881_s0 + $0x10] sm:$0xff] (!%p148_p2)  }
   0x6   : > { %151 = sbr.rel (%p148_p2) target bundleno = 586 (0x24a), region = 32  ;;  %3281 = vmatprep.mubr.msk.bf16.mxu0 (!%p148_p2), %vm256_vm0, %v3452_v0  ;;  %v3456_v1 = vld [vmem:[%s3881_s0 + $0x20] sm:$0xff] (!%p148_p2)   ;;  %v3457_v5 = vld [vmem:[%s3881_s0 + $0x28] sm:$0xff] (!%p148_p2)   ;;  %v3458_v6 = vld [vmem:[%s3881_s0 + $0x30] sm:$0xff] (!%p148_p2)  }
   0x7   : > { %3289 = vmatprep.mubr.msk.bf16.mxu1 (!%p148_p2), %vm256_vm0, %v3456_v1  ;;  %v3455_v7 = vld [vmem:[%s3881_s0 + $0x18] sm:$0xff] (!%p148_p2)  }
   0x8   : > { %v3459_v8 = vld [vmem:[%s3881_s0 + $0x38] sm:$0xff] (!%p148_p2)  }
   0xd   : > { %s3886_s13 = smov (!%p176_p3, %s2781_s13), 3 }
   0xe   : > { %s3067_s16 = sshll.u32 %s3886_s13, 3  ;;  %s3068_s20 = sshll.u32 %s3886_s13, 6 }
   0xf   : > { %s180_s19 = scalar_lea.vmem %s3882_s1, %s3067_s16  ;;  %s3584_s29 = scalar_lea.vmem %s3883_s2, %s3068_s20 }
  0x10   : > { %v3451_v2 = vld [vmem:[%s180_s19] sm:$0xff]   ;;  %v3463_v23 = vld [vmem:[%s3584_s29 + $0x8] sm:$0xff]   ;;  %v3465_v25 = vld [vmem:[%s3584_s29 + $0x10] sm:$0xff]   ;;  %s3069_s11 = sshll.u32 %s3886_s13, 9 }
  0x11   : > { %3279 = vmatprep.subr.bf16.mxu0 %v3451_v2  ;;  %3441 = vmatprep.subr.bf16.mxu1 %v3451_v2  ;;  %v3461_v9 = vld [vmem:[%s3584_s29] sm:$0xff]   ;;  %v3462_v24 = vld [vmem:[%s3584_s29 + $0x8] sm:$0xff]   ;;  %v3464_v26 = vld [vmem:[%s3584_s29 + $0x10] sm:$0xff]   ;;  %s3748_s16 = scalar_lea.vmem %s3884_s3, %s3069_s11 }
  0x12   : > { %3280 = vmatpush3.bf16.msra.mxu0 %v3451_v2  ;;  %3442 = vmatpush3.bf16.msra.mxu1 %v3451_v2  ;;  %v3460_v10 = vld [vmem:[%s3584_s29] sm:$0xff]   ;;  %v3467_v39 = vld [vmem:[%s3584_s29 + $0x18] sm:$0xff]   ;;  %v3471_v43 = vld [vmem:[%s3584_s29 + $0x28] sm:$0xff]  }
  0x13   : > { %v3466_v40 = vld [vmem:[%s3584_s29 + $0x18] sm:$0xff]   ;;  %v3469_v41 = vld [vmem:[%s3584_s29 + $0x20] sm:$0xff]   ;;  %v3470_v44 = vld [vmem:[%s3584_s29 + $0x28] sm:$0xff]  }
  0x14   : > { %v3468_v42 = vld [vmem:[%s3584_s29 + $0x20] sm:$0xff]   ;;  %v3473_v45 = vld [vmem:[%s3584_s29 + $0x30] sm:$0xff]   ;;  %v3475_v47 = vld [vmem:[%s3584_s29 + $0x38] sm:$0xff]  }
  0x15   : > { %3282 = vmatmul.mubr.msk.bf16.vlgmr.msra.gmra.mrb[0].mxu0 %vm256_vm0, %v3453_v3  ;;  %3290 = vmatmul.mubr.msk.bf16.vlgmr.msra.gmra.mrb[0].mxu1 %vm256_vm0, %v3457_v5  ;;  %v3472_v46 = vld [vmem:[%s3584_s29 + $0x30] sm:$0xff]   ;;  %v3474_v48 = vld [vmem:[%s3584_s29 + $0x38] sm:$0xff]   ;;  %v3477_v49 = vld [vmem:[%s3584_s29] sm:$0xff]  }
  0x16   : > { %3285 = vmatprep.mubr.msk.bf16.mxu0 %vm256_vm0, %v3454_v4  ;;  %3293 = vmatprep.mubr.msk.bf16.mxu1 %vm256_vm0, %v3458_v6  ;;  %v3476_v50 = vld [vmem:[%s3584_s29] sm:$0xff]   ;;  %v3479_v51 = vld [vmem:[%s3584_s29 + $0x8] sm:$0xff]   ;;  %v3480_v53 = vld [vmem:[%s3584_s29 + $0x10] sm:$0xff]  }
  0x17   : > { %v3478_v52 = vld [vmem:[%s3584_s29 + $0x8] sm:$0xff]   ;;  %v3481_v54 = vld [vmem:[%s3584_s29 + $0x10] sm:$0xff]   ;;  %v3483_v55 = vld [vmem:[%s3584_s29 + $0x18] sm:$0xff]  }
  0x18   : > { %v3482_v56 = vld [vmem:[%s3584_s29 + $0x18] sm:$0xff]   ;;  %v3485_v57 = vld [vmem:[%s3584_s29 + $0x20] sm:$0xff]   ;;  %v3487_v59 = vld [vmem:[%s3584_s29 + $0x28] sm:$0xff]  }
  0x19   : > { %v3484_v58 = vld [vmem:[%s3584_s29 + $0x20] sm:$0xff]   ;;  %v3486_v60 = vld [vmem:[%s3584_s29 + $0x28] sm:$0xff]   ;;  %v3489_v61 = vld [vmem:[%s3584_s29 + $0x30] sm:$0xff]  }
  0x1a   : > { %v3488_v62 = vld [vmem:[%s3584_s29 + $0x30] sm:$0xff]   ;;  %v3491_v63 = vld [vmem:[%s3584_s29 + $0x38] sm:$0xff]   ;;  %v3493_v1 = vld [vmem:[%s3584_s29] sm:$0xff]  }
  0x1b   : > { %v3490_v0 = vld [vmem:[%s3584_s29 + $0x38] sm:$0xff]   ;;  %v3492_v2 = vld [vmem:[%s3584_s29] sm:$0xff]   ;;  %v3495_v3 = vld [vmem:[%s3584_s29 + $0x8] sm:$0xff]  }
  0x1c   : > { %v3494_v4 = vld [vmem:[%s3584_s29 + $0x8] sm:$0xff]   ;;  %v3496_v5 = vld [vmem:[%s3584_s29 + $0x10] sm:$0xff]  }
  0x1d   : > { %3286 = vmatmul.mubr.msk.bf16.gmra.mrb[4].mxu0 %vm256_vm0, %v3455_v7  ;;  %3294 = vmatmul.mubr.msk.bf16.gmra.mrb[4].mxu1 %vm256_vm0, %v3459_v8  ;;  %v3497_v6 = vld [vmem:[%s3584_s29 + $0x10] sm:$0xff]   ;;  %v3499_v7 = vld [vmem:[%s3584_s29 + $0x18] sm:$0xff]  }
  0x1e   : > { %3317 = vmatprep.mubr.msk.bf16.mxu0 %vm256_vm0, %v3461_v9  ;;  %3299 = vmatprep.mubr.msk.bf16.mxu1 %vm256_vm0, %v3460_v10  ;;  %v3498_v8 = vld [vmem:[%s3584_s29 + $0x18] sm:$0xff]   ;;  %v3501_v9 = vld [vmem:[%s3584_s29 + $0x20] sm:$0xff]  }
  0x1f   : > { %v3500_v10 = vld [vmem:[%s3584_s29 + $0x20] sm:$0xff]  }
  0xe8   : > { %v3283_v11 = vpop.f32.mrb[0].mxu0  ;;  %v3291_v12 = vpop.f32.mrb[0].mxu1 }
  0xe9   : > { %v315_v13 = vpop.f32.mrb[1].mxu0  ;;  %v347_v14 = vpop.f32.mrb[1].mxu1 }
  0xea   : > { %v3284_v15 = vpop.f32.mrb[2].mxu0  ;;  %v3292_v16 = vpop.f32.mrb[2].mxu1 }
  0xeb   : > { %v379_v17 = vpack.c.bf16 %v3284_v15, %v3283_v11  ;;  %v318_v18 = vpop.f32.mrb[3].mxu0  ;;  %v3608_v19 = vpack.c.bf16 %v3292_v16, %v3291_v12  ;;  %v350_v20 = vpop.f32.mrb[3].mxu1  ;;  %v3503_v11 = vld [vmem:[%s3584_s29 + $0x28] sm:$0xff]   ;;  %v3507_v15 = vld [vmem:[%s3584_s29 + $0x38] sm:$0xff]  }
  0xec   : > { %v378_v21 = vpack.c.bf16 %v318_v18, %v315_v13  ;;  %v382_v22 = vpack.c.bf16 %v350_v20, %v347_v14  ;;  %v3502_v12 = vld [vmem:[%s3584_s29 + $0x28] sm:$0xff]   ;;  %v3505_v13 = vld [vmem:[%s3584_s29 + $0x30] sm:$0xff]   ;;  %v3506_v16 = vld [vmem:[%s3584_s29 + $0x38] sm:$0xff]  }
  0xed   : > { %3315 = vmatprep.subr.bf16.mxu0 %v379_v17  ;;  %v3504_v14 = vld [vmem:[%s3584_s29 + $0x30] sm:$0xff]   ;;  %v3508_v18 = vld [vmem:[%s3584_s29] sm:$0xff]   ;;  %v3510_v20 = vld [vmem:[%s3584_s29 + $0x8] sm:$0xff]  }
  0xee   : > { %3297 = vmatprep.subr.bf16.mxu1 %v378_v21  ;;  %3316 = vmatpush3.bf16.msra.mxu0 %v379_v17  ;;  %v3509_v17 = vld [vmem:[%s3584_s29] sm:$0xff]  }
  0xef   : > { %3298 = vmatpush3.bf16.msra.mxu1 %v378_v21  ;;  %v3513_v21 = vld [vmem:[%s3584_s29 + $0x10] sm:$0xff]  }
  0xf0   : > { %v3287_v27 = vpop.f32.mrb[4].mxu0  ;;  %v3295_v28 = vpop.f32.mrb[4].mxu1 }
  0xf1   : > { %v331_v29 = vpop.f32.mrb[5].mxu0  ;;  %3318 = vmatmul.mubr.msk.bf16.vlgmr.msra.gmra.mrb[8].mxu0 %vm256_vm0, %v3463_v23  ;;  %v363_v30 = vpop.f32.mrb[5].mxu1  ;;  %v3515_v23 = vld [vmem:[%s3584_s29 + $0x18] sm:$0xff]  }
  0xf2   : > { %v3288_v31 = vpop.f32.mrb[6].mxu0  ;;  %3300 = vmatmul.mubr.msk.bf16.vlgmr.msra.gmra.mrb[8].mxu1 %vm256_vm0, %v3462_v24  ;;  %3321 = vmatprep.mubr.msk.bf16.mxu0 %vm256_vm0, %v3465_v25  ;;  %v3296_v32 = vpop.f32.mrb[6].mxu1  ;;  %v3514_v24 = vld [vmem:[%s3584_s29 + $0x18] sm:$0xff]   ;;  %v3517_v25 = vld [vmem:[%s3584_s29 + $0x20] sm:$0xff]  }
  0xf3   : > { %v381_v33 = vpack.c.bf16 %v3288_v31, %v3287_v27  ;;  %v334_v34 = vpop.f32.mrb[7].mxu0  ;;  %3303 = vmatprep.mubr.msk.bf16.mxu1 %vm256_vm0, %v3464_v26  ;;  %v3618_v35 = vpack.c.bf16 %v3296_v32, %v3295_v28  ;;  %v366_v36 = vpop.f32.mrb[7].mxu1  ;;  %v3516_v26 = vld [vmem:[%s3584_s29 + $0x20] sm:$0xff]   ;;  %v3519_v27 = vld [vmem:[%s3584_s29 + $0x28] sm:$0xff]   ;;  %v3523_v31 = vld [vmem:[%s3584_s29 + $0x38] sm:$0xff]  }
  0xf4   : > { %v380_v37 = vpack.c.bf16 %v334_v34, %v331_v29  ;;  %v3620_v38 = vpack.c.bf16 %v366_v36, %v363_v30  ;;  %v3518_v28 = vld [vmem:[%s3584_s29 + $0x28] sm:$0xff]   ;;  %v3521_v29 = vld [vmem:[%s3584_s29 + $0x30] sm:$0xff]   ;;  %v3522_v32 = vld [vmem:[%s3584_s29 + $0x38] sm:$0xff]  }
  0xf5   : > { %3351 = vmatprep.subr.bf16.mxu0 %v381_v33  ;;  %v3520_v30 = vld [vmem:[%s3584_s29 + $0x30] sm:$0xff]  }
  0xf6   : > { %3333 = vmatprep.subr.bf16.mxu1 %v380_v37  ;;  %3352 = vmatpush3.bf16.msra.mxu0 %v381_v33 }
  0xf7   : > { %3334 = vmatpush3.bf16.msra.mxu1 %v380_v37  ;;  %3387 = vmatprep.subr.bf16.mxu0 %v3608_v19 }
  0xf8   : > { %3369 = vmatprep.subr.bf16.mxu1 %v382_v22 }
  0xf9   : > { %3322 = vmatmul.mubr.msk.bf16.gmra.mrb[12].mxu0 %vm256_vm0, %v3467_v39 }
  0xfa   : > { %3304 = vmatmul.mubr.msk.bf16.gmra.mrb[12].mxu1 %vm256_vm0, %v3466_v40  ;;  %3325 = vmatprep.mubr.msk.bf16.mxu0 %vm256_vm0, %v3469_v41 }
  0xfb   : > { %3307 = vmatprep.mubr.msk.bf16.mxu1 %vm256_vm0, %v3468_v42 }
 0x101   : > { %3326 = vmatmul.mubr.msk.bf16.gmra.mrb[16].mxu0 %vm256_vm0, %v3471_v43 }
 0x102   : > { %3308 = vmatmul.mubr.msk.bf16.gmra.mrb[16].mxu1 %vm256_vm0, %v3470_v44  ;;  %3329 = vmatprep.mubr.msk.bf16.mxu0 %vm256_vm0, %v3473_v45 }
 0x103   : > { %3311 = vmatprep.mubr.msk.bf16.mxu1 %vm256_vm0, %v3472_v46 }
 0x109   : > { %3330 = vmatmul.mubr.msk.bf16.gmra.mrb[20].mxu0 %vm256_vm0, %v3475_v47 }
 0x10a   : > { %3312 = vmatmul.mubr.msk.bf16.gmra.mrb[20].mxu1 %vm256_vm0, %v3474_v48  ;;  %3353 = vmatprep.mubr.msk.bf16.mxu0 %vm256_vm0, %v3477_v49 }
 0x10b   : > { %3335 = vmatprep.mubr.msk.bf16.mxu1 %vm256_vm0, %v3476_v50 }
 0x111   : > { %3354 = vmatmul.mubr.msk.bf16.vlgmr.msra.gmra.mrb[24].mxu0 %vm256_vm0, %v3479_v51 }
 0x112   : > { %3336 = vmatmul.mubr.msk.bf16.vlgmr.msra.gmra.mrb[24].mxu1 %vm256_vm0, %v3478_v52  ;;  %3388 = vmatpush3.bf16.msra.mxu0 %v3608_v19  ;;  %v3511_v19 = vld [vmem:[%s3584_s29 + $0x8] sm:$0xff]  }
 0x113   : > { %3370 = vmatpush3.bf16.msra.mxu1 %v382_v22  ;;  %3339 = vmatprep.mubr.msk.bf16.mxu1 %vm256_vm0, %v3480_v53  ;;  %v3512_v22 = vld [vmem:[%s3584_s29 + $0x10] sm:$0xff]  }
 0x114   : > { %3357 = vmatprep.mubr.msk.bf16.mxu0 %vm256_vm0, %v3481_v54  ;;  %3405 = vmatprep.subr.bf16.mxu1 %v3620_v38 }
 0x115   : > { %3423 = vmatprep.subr.bf16.mxu0 %v3618_v35 }
 0x119   : > { %3358 = vmatmul.mubr.msk.bf16.gmra.mrb[28].mxu0 %vm256_vm0, %v3483_v55 }
 0x11a   : > { %3340 = vmatmul.mubr.msk.bf16.gmra.mrb[28].mxu1 %vm256_vm0, %v3482_v56  ;;  %3361 = vmatprep.mubr.msk.bf16.mxu0 %vm256_vm0, %v3485_v57 }
 0x11b   : > { %3343 = vmatprep.mubr.msk.bf16.mxu1 %vm256_vm0, %v3484_v58 }
 0x121   : > { %3362 = vmatmul.mubr.msk.bf16.gmra.mrb[32].mxu0 %vm256_vm0, %v3487_v59 }
 0x122   : > { %3344 = vmatmul.mubr.msk.bf16.gmra.mrb[32].mxu1 %vm256_vm0, %v3486_v60  ;;  %3365 = vmatprep.mubr.msk.bf16.mxu0 %vm256_vm0, %v3489_v61 }
 0x123   : > { %3347 = vmatprep.mubr.msk.bf16.mxu1 %vm256_vm0, %v3488_v62 }
 0x129   : > { %3366 = vmatmul.mubr.msk.bf16.gmra.mrb[36].mxu0 %vm256_vm0, %v3491_v63 }
 0x12a   : > { %3348 = vmatmul.mubr.msk.bf16.gmra.mrb[36].mxu1 %vm256_vm0, %v3490_v0  ;;  %3389 = vmatprep.mubr.msk.bf16.mxu0 %vm256_vm0, %v3493_v1 }
 0x12b   : > { %3371 = vmatprep.mubr.msk.bf16.mxu1 %vm256_vm0, %v3492_v2 }
 0x131   : > { %3390 = vmatmul.mubr.msk.bf16.vlgmr.msra.gmra.mrb[40].mxu0 %vm256_vm0, %v3495_v3 }
 0x132   : > { %3372 = vmatmul.mubr.msk.bf16.vlgmr.msra.gmra.mrb[40].mxu1 %vm256_vm0, %v3494_v4  ;;  %3424 = vmatpush3.bf16.msra.mxu0 %v3618_v35 }
 0x133   : > { %3406 = vmatpush3.bf16.msra.mxu1 %v3620_v38  ;;  %3375 = vmatprep.mubr.msk.bf16.mxu1 %vm256_vm0, %v3496_v5 }
 0x134   : > { %3393 = vmatprep.mubr.msk.bf16.mxu0 %vm256_vm0, %v3497_v6 }
 0x139   : > { %3394 = vmatmul.mubr.msk.bf16.gmra.mrb[44].mxu0 %vm256_vm0, %v3499_v7 }
 0x13a   : > { %3376 = vmatmul.mubr.msk.bf16.gmra.mrb[44].mxu1 %vm256_vm0, %v3498_v8  ;;  %3397 = vmatprep.mubr.msk.bf16.mxu0 %vm256_vm0, %v3501_v9 }
 0x13b   : > { %3379 = vmatprep.mubr.msk.bf16.mxu1 %vm256_vm0, %v3500_v10 }
 0x141   : > { %3398 = vmatmul.mubr.msk.bf16.gmra.mrb[48].mxu0 %vm256_vm0, %v3503_v11 }
 0x142   : > { %3380 = vmatmul.mubr.msk.bf16.gmra.mrb[48].mxu1 %vm256_vm0, %v3502_v12  ;;  %3401 = vmatprep.mubr.msk.bf16.mxu0 %vm256_vm0, %v3505_v13 }
 0x143   : > { %3383 = vmatprep.mubr.msk.bf16.mxu1 %vm256_vm0, %v3504_v14 }
 0x149   : > { %3402 = vmatmul.mubr.msk.bf16.gmra.mrb[52].mxu0 %vm256_vm0, %v3507_v15 }
 0x14a   : > { %3384 = vmatmul.mubr.msk.bf16.gmra.mrb[52].mxu1 %vm256_vm0, %v3506_v16  ;;  %3425 = vmatprep.mubr.msk.bf16.mxu0 %vm256_vm0, %v3509_v17 }
 0x14b   : > { %3407 = vmatprep.mubr.msk.bf16.mxu1 %vm256_vm0, %v3508_v18 }
 0x151   : > { %3426 = vmatmul.mubr.msk.bf16.vlgmr.msra.gmra.mrb[56].mxu0 %vm256_vm0, %v3511_v19 }
 0x152   : > { %3408 = vmatmul.mubr.msk.bf16.vlgmr.msra.gmra.mrb[56].mxu1 %vm256_vm0, %v3510_v20  ;;  %3429 = vmatprep.mubr.msk.bf16.mxu0 %vm256_vm0, %v3513_v21 }
 0x153   : > { %3411 = vmatprep.mubr.msk.bf16.mxu1 %vm256_vm0, %v3512_v22 }
 0x159   : > { %3430 = vmatmul.mubr.msk.bf16.gmra.mrb[60].mxu0 %vm256_vm0, %v3515_v23 }
 0x15a   : > { %3412 = vmatmul.mubr.msk.bf16.gmra.mrb[60].mxu1 %vm256_vm0, %v3514_v24  ;;  %3433 = vmatprep.mubr.msk.bf16.mxu0 %vm256_vm0, %v3517_v25 }
 0x15b   : > { %3415 = vmatprep.mubr.msk.bf16.mxu1 %vm256_vm0, %v3516_v26 }
 0x161   : > { %3434 = vmatmul.mubr.msk.bf16.gmra.mrb[64].mxu0 %vm256_vm0, %v3519_v27 }
 0x162   : > { %3416 = vmatmul.mubr.msk.bf16.gmra.mrb[64].mxu1 %vm256_vm0, %v3518_v28  ;;  %3437 = vmatprep.mubr.msk.bf16.mxu0 %vm256_vm0, %v3521_v29 }
 0x163   : > { %3419 = vmatprep.mubr.msk.bf16.mxu1 %vm256_vm0, %v3520_v30 }
 0x169   : > { %3438 = vmatmul.mubr.msk.bf16.gmra.mrb[68].mxu0 %vm256_vm0, %v3523_v31 }
 0x16a   : > { %3420 = vmatmul.mubr.msk.bf16.gmra.mrb[68].mxu1 %vm256_vm0, %v3522_v32 }
 0x1c4   : > { %v3319_v33 = vpop.f32.mrb[8].mxu0 }
 0x1c5   : > { %v3301_v34 = vpop.f32.mrb[8].mxu1  ;;  %v864_v35 = vmax.f32 %v3319_v33, 0.0  ;;  %v799_v36 = vpop.f32.mrb[9].mxu0 }
 0x1c6   : > { %v574_v37 = vmax.f32 %v3301_v34, 0.0  ;;  %v509_v38 = vpop.f32.mrb[9].mxu1  ;;  %v862_v39 = vmax.f32 %v799_v36, 0.0  ;;  %v3320_v40 = vpop.f32.mrb[10].mxu0 }
 0x1c7   : > { %v880_v41 = vmin.f32 %v864_v35, 1.0  ;;  %v572_v42 = vmax.f32 %v509_v38, 0.0  ;;  %v3302_v43 = vpop.f32.mrb[10].mxu1  ;;  %v865_v44 = vmax.f32 %v3320_v40, 0.0  ;;  %v802_v45 = vpop.f32.mrb[11].mxu0 }
 0x1c8   : > { %v590_v46 = vmin.f32 %v574_v37, 1.0  ;;  %v878_v47 = vmin.f32 %v862_v39, 1.0  ;;  %v575_v48 = vmax.f32 %v3302_v43, 0.0  ;;  %v512_v49 = vpop.f32.mrb[11].mxu1  ;;  %v863_v50 = vmax.f32 %v802_v45, 0.0 }
 0x1c9   : > { %v3088_v51 = vpack.c.bf16 %v880_v41, %v880_v41  ;;  %v588_v52 = vmin.f32 %v572_v42, 1.0  ;;  %v881_v53 = vmin.f32 %v865_v44, 1.0  ;;  %v573_v54 = vmax.f32 %v512_v49, 0.0 }
 0x1ca   : > { %v3072_v55 = vpack.c.bf16 %v590_v46, %v590_v46  ;;  %v3086_v56 = vpack.c.bf16 %v878_v47, %v878_v47  ;;  %v591_v57 = vmin.f32 %v575_v48, 1.0  ;;  %v879_v58 = vmin.f32 %v863_v50, 1.0 }
 0x1cb   : > { %960 = vst [vmem:[%s3748_s16 + $0x44] sm:$0xf] %v3088_v51  ;;  %v3070_v59 = vpack.c.bf16 %v588_v52, %v588_v52  ;;  %v3089_v60 = vpack.c.bf16 %v881_v53, %v881_v53  ;;  %v589_v61 = vmin.f32 %v573_v54, 1.0 }
 0x1cc   : > { %670 = vst [vmem:[%s3748_s16 + $0x40] sm:$0xf] %v3072_v55  ;;  %958 = vst [vmem:[%s3748_s16 + $0x4] sm:$0xf] %v3086_v56  ;;  %v3073_v62 = vpack.c.bf16 %v591_v57, %v591_v57  ;;  %v3087_v63 = vpack.c.bf16 %v879_v58, %v879_v58  ;;  %v3323_v0 = vpop.f32.mrb[12].mxu0 }
 0x1cd   : > { %668 = vst [vmem:[%s3748_s16] sm:$0xf] %v3070_v59  ;;  %961 = vst [vmem:[%s3748_s16 + $0x64] sm:$0xf] %v3089_v60  ;;  %v3071_v1 = vpack.c.bf16 %v589_v61, %v589_v61  ;;  %v3305_v2 = vpop.f32.mrb[12].mxu1  ;;  %v868_v3 = vmax.f32 %v3323_v0, 0.0  ;;  %v815_v4 = vpop.f32.mrb[13].mxu0 }
 0x1ce   : > { %671 = vst [vmem:[%s3748_s16 + $0x60] sm:$0xf] %v3073_v62  ;;  %959 = vst [vmem:[%s3748_s16 + $0x24] sm:$0xf] %v3087_v63  ;;  %v578_v5 = vmax.f32 %v3305_v2, 0.0  ;;  %v525_v6 = vpop.f32.mrb[13].mxu1 }
 0x1cf   : > { %v866_v7 = vmax.f32 %v815_v4, 0.0  ;;  %v3324_v8 = vpop.f32.mrb[14].mxu0  ;;  %669 = vst [vmem:[%s3748_s16 + $0x20] sm:$0xf] %v3071_v1  ;;  %v884_v9 = vmin.f32 %v868_v3, 1.0  ;;  %v576_v10 = vmax.f32 %v525_v6, 0.0 }
 0x1d0   : > { %v3306_v11 = vpop.f32.mrb[14].mxu1  ;;  %v869_v12 = vmax.f32 %v3324_v8, 0.0  ;;  %v818_v13 = vpop.f32.mrb[15].mxu0  ;;  %v594_v14 = vmin.f32 %v578_v5, 1.0 }
 0x1d1   : > { %v882_v15 = vmin.f32 %v866_v7, 1.0  ;;  %v579_v16 = vmax.f32 %v3306_v11, 0.0  ;;  %v528_v17 = vpop.f32.mrb[15].mxu1  ;;  %v867_v18 = vmax.f32 %v818_v13, 0.0  ;;  %v3092_v19 = vpack.c.bf16 %v884_v9, %v884_v9 }
 0x1d2   : > { %v592_v20 = vmin.f32 %v576_v10, 1.0  ;;  %v885_v21 = vmin.f32 %v869_v12, 1.0  ;;  %v577_v22 = vmax.f32 %v528_v17, 0.0  ;;  %v3076_v23 = vpack.c.bf16 %v594_v14, %v594_v14 }
 0x1d3   : > { %v3090_v24 = vpack.c.bf16 %v882_v15, %v882_v15  ;;  %v595_v25 = vmin.f32 %v579_v16, 1.0  ;;  %v883_v26 = vmin.f32 %v867_v18, 1.0  ;;  %964 = vst [vmem:[%s3748_s16 + $0xc4] sm:$0xf] %v3092_v19 }
 0x1d4   : > { %v3074_v27 = vpack.c.bf16 %v592_v20, %v592_v20  ;;  %v3093_v28 = vpack.c.bf16 %v885_v21, %v885_v21  ;;  %v593_v29 = vmin.f32 %v577_v22, 1.0  ;;  %674 = vst [vmem:[%s3748_s16 + $0xc0] sm:$0xf] %v3076_v23  ;;  %v3327_v32 = vpop.f32.mrb[16].mxu0 }
 0x1d5   : > { %962 = vst [vmem:[%s3748_s16 + $0x84] sm:$0xf] %v3090_v24  ;;  %v3077_v30 = vpack.c.bf16 %v595_v25, %v595_v25  ;;  %v3091_v31 = vpack.c.bf16 %v883_v26, %v883_v26  ;;  %v3309_v34 = vpop.f32.mrb[16].mxu1  ;;  %v872_v35 = vmax.f32 %v3327_v32, 0.0  ;;  %v831_v36 = vpop.f32.mrb[17].mxu0 }
 0x1d6   : > { %672 = vst [vmem:[%s3748_s16 + $0x80] sm:$0xf] %v3074_v27  ;;  %965 = vst [vmem:[%s3748_s16 + $0xe4] sm:$0xf] %v3093_v28  ;;  %v3075_v33 = vpack.c.bf16 %v593_v29, %v593_v29  ;;  %v582_v37 = vmax.f32 %v3309_v34, 0.0  ;;  %v541_v38 = vpop.f32.mrb[17].mxu1 }
 0x1d7   : > { %675 = vst [vmem:[%s3748_s16 + $0xe0] sm:$0xf] %v3077_v30  ;;  %963 = vst [vmem:[%s3748_s16 + $0xa4] sm:$0xf] %v3091_v31  ;;  %v870_v39 = vmax.f32 %v831_v36, 0.0  ;;  %v3328_v40 = vpop.f32.mrb[18].mxu0 }
 0x1d8   : > { %673 = vst [vmem:[%s3748_s16 + $0xa0] sm:$0xf] %v3075_v33  ;;  %v888_v41 = vmin.f32 %v872_v35, 1.0  ;;  %v580_v42 = vmax.f32 %v541_v38, 0.0  ;;  %v3310_v43 = vpop.f32.mrb[18].mxu1  ;;  %v873_v44 = vmax.f32 %v3328_v40, 0.0 }
 0x1d9   : > { %v834_v45 = vpop.f32.mrb[19].mxu0  ;;  %v598_v46 = vmin.f32 %v582_v37, 1.0  ;;  %v886_v47 = vmin.f32 %v870_v39, 1.0  ;;  %v583_v48 = vmax.f32 %v3310_v43, 0.0  ;;  %v544_v49 = vpop.f32.mrb[19].mxu1 }
 0x1da   : > { %v871_v50 = vmax.f32 %v834_v45, 0.0  ;;  %v3096_v51 = vpack.c.bf16 %v888_v41, %v888_v41  ;;  %v596_v52 = vmin.f32 %v580_v42, 1.0  ;;  %v889_v53 = vmin.f32 %v873_v44, 1.0 }
 0x1db   : > { %v581_v54 = vmax.f32 %v544_v49, 0.0  ;;  %v3080_v55 = vpack.c.bf16 %v598_v46, %v598_v46  ;;  %v3094_v56 = vpack.c.bf16 %v886_v47, %v886_v47  ;;  %v599_v57 = vmin.f32 %v583_v48, 1.0 }
 0x1dc   : > { %v887_v58 = vmin.f32 %v871_v50, 1.0  ;;  %968 = vst [vmem:[%s3748_s16 + $0x144] sm:$0xf] %v3096_v51  ;;  %v3078_v59 = vpack.c.bf16 %v596_v52, %v596_v52  ;;  %v3097_v60 = vpack.c.bf16 %v889_v53, %v889_v53  ;;  %v3331_v0 = vpop.f32.mrb[20].mxu0 }
 0x1dd   : > { %v597_v61 = vmin.f32 %v581_v54, 1.0  ;;  %678 = vst [vmem:[%s3748_s16 + $0x140] sm:$0xf] %v3080_v55  ;;  %966 = vst [vmem:[%s3748_s16 + $0x104] sm:$0xf] %v3094_v56  ;;  %v3081_v62 = vpack.c.bf16 %v599_v57, %v599_v57  ;;  %v3313_v2 = vpop.f32.mrb[20].mxu1 }
 0x1de   : > { %v3095_v63 = vpack.c.bf16 %v887_v58, %v887_v58  ;;  %676 = vst [vmem:[%s3748_s16 + $0x100] sm:$0xf] %v3078_v59  ;;  %969 = vst [vmem:[%s3748_s16 + $0x164] sm:$0xf] %v3097_v60  ;;  %v876_v3 = vmax.f32 %v3331_v0, 0.0  ;;  %v847_v4 = vpop.f32.mrb[21].mxu0 }
 0x1df   : > { %v3079_v1 = vpack.c.bf16 %v597_v61, %v597_v61  ;;  %679 = vst [vmem:[%s3748_s16 + $0x160] sm:$0xf] %v3081_v62  ;;  %v586_v5 = vmax.f32 %v3313_v2, 0.0  ;;  %v557_v6 = vpop.f32.mrb[21].mxu1  ;;  %v874_v7 = vmax.f32 %v847_v4, 0.0  ;;  %v3332_v8 = vpop.f32.mrb[22].mxu0 }
 0x1e0   : > { %967 = vst [vmem:[%s3748_s16 + $0x124] sm:$0xf] %v3095_v63  ;;  %v892_v9 = vmin.f32 %v876_v3, 1.0  ;;  %v584_v10 = vmax.f32 %v557_v6, 0.0  ;;  %v3314_v11 = vpop.f32.mrb[22].mxu1  ;;  %v877_v12 = vmax.f32 %v3332_v8, 0.0 }
 0x1e1   : > { %677 = vst [vmem:[%s3748_s16 + $0x120] sm:$0xf] %v3079_v1  ;;  %v850_v13 = vpop.f32.mrb[23].mxu0  ;;  %v602_v14 = vmin.f32 %v586_v5, 1.0  ;;  %v890_v15 = vmin.f32 %v874_v7, 1.0  ;;  %v587_v16 = vmax.f32 %v3314_v11, 0.0 }
 0x1e2   : > { %v560_v17 = vpop.f32.mrb[23].mxu1  ;;  %v875_v18 = vmax.f32 %v850_v13, 0.0  ;;  %v3100_v19 = vpack.c.bf16 %v892_v9, %v892_v9  ;;  %v600_v20 = vmin.f32 %v584_v10, 1.0  ;;  %v893_v21 = vmin.f32 %v877_v12, 1.0 }
 0x1e3   : > { %v585_v22 = vmax.f32 %v560_v17, 0.0  ;;  %v3084_v23 = vpack.c.bf16 %v602_v14, %v602_v14  ;;  %v3098_v24 = vpack.c.bf16 %v890_v15, %v890_v15  ;;  %v603_v25 = vmin.f32 %v587_v16, 1.0 }
 0x1e4   : > { %v891_v26 = vmin.f32 %v875_v18, 1.0  ;;  %972 = vst [vmem:[%s3748_s16 + $0x1c4] sm:$0xf] %v3100_v19  ;;  %v3082_v27 = vpack.c.bf16 %v600_v20, %v600_v20  ;;  %v3101_v28 = vpack.c.bf16 %v893_v21, %v893_v21  ;;  %v3355_v32 = vpop.f32.mrb[24].mxu0 }
 0x1e5   : > { %v601_v29 = vmin.f32 %v585_v22, 1.0  ;;  %682 = vst [vmem:[%s3748_s16 + $0x1c0] sm:$0xf] %v3084_v23  ;;  %970 = vst [vmem:[%s3748_s16 + $0x184] sm:$0xf] %v3098_v24  ;;  %v3085_v30 = vpack.c.bf16 %v603_v25, %v603_v25  ;;  %v3337_v34 = vpop.f32.mrb[24].mxu1 }
 0x1e6   : > { %v3099_v31 = vpack.c.bf16 %v891_v26, %v891_v26  ;;  %680 = vst [vmem:[%s3748_s16 + $0x180] sm:$0xf] %v3082_v27  ;;  %973 = vst [vmem:[%s3748_s16 + $0x1e4] sm:$0xf] %v3101_v28  ;;  %v1444_v35 = vmax.f32 %v3355_v32, 0.0  ;;  %v1379_v36 = vpop.f32.mrb[25].mxu0 }
 0x1e7   : > { %v3083_v33 = vpack.c.bf16 %v601_v29, %v601_v29  ;;  %683 = vst [vmem:[%s3748_s16 + $0x1e0] sm:$0xf] %v3085_v30  ;;  %v1154_v37 = vmax.f32 %v3337_v34, 0.0  ;;  %v1089_v38 = vpop.f32.mrb[25].mxu1  ;;  %v1442_v39 = vmax.f32 %v1379_v36, 0.0  ;;  %v3356_v40 = vpop.f32.mrb[26].mxu0 }
 0x1e8   : > { %971 = vst [vmem:[%s3748_s16 + $0x1a4] sm:$0xf] %v3099_v31  ;;  %v1460_v41 = vmin.f32 %v1444_v35, 1.0  ;;  %v1152_v42 = vmax.f32 %v1089_v38, 0.0  ;;  %v3338_v43 = vpop.f32.mrb[26].mxu1  ;;  %v1445_v44 = vmax.f32 %v3356_v40, 0.0 }
 0x1e9   : > { %681 = vst [vmem:[%s3748_s16 + $0x1a0] sm:$0xf] %v3083_v33  ;;  %v1382_v45 = vpop.f32.mrb[27].mxu0  ;;  %v1170_v46 = vmin.f32 %v1154_v37, 1.0  ;;  %v1458_v47 = vmin.f32 %v1442_v39, 1.0  ;;  %v1155_v48 = vmax.f32 %v3338_v43, 0.0 }
 0x1ea   : > { %v1092_v49 = vpop.f32.mrb[27].mxu1  ;;  %v1443_v50 = vmax.f32 %v1382_v45, 0.0  ;;  %v3120_v51 = vpack.c.bf16 %v1460_v41, %v1460_v41  ;;  %v1168_v52 = vmin.f32 %v1152_v42, 1.0  ;;  %v1461_v53 = vmin.f32 %v1445_v44, 1.0 }
 0x1eb   : > { %v1153_v54 = vmax.f32 %v1092_v49, 0.0  ;;  %v3104_v55 = vpack.c.bf16 %v1170_v46, %v1170_v46  ;;  %v3118_v56 = vpack.c.bf16 %v1458_v47, %v1458_v47  ;;  %v1171_v57 = vmin.f32 %v1155_v48, 1.0 }
 0x1ec   : > { %v1459_v58 = vmin.f32 %v1443_v50, 1.0  ;;  %1540 = vst [vmem:[%s3748_s16 + $0x4c] sm:$0xf] %v3120_v51  ;;  %v3102_v59 = vpack.c.bf16 %v1168_v52, %v1168_v52  ;;  %v3121_v60 = vpack.c.bf16 %v1461_v53, %v1461_v53  ;;  %v3359_v0 = vpop.f32.mrb[28].mxu0 }
 0x1ed   : > { %v1169_v61 = vmin.f32 %v1153_v54, 1.0  ;;  %1250 = vst [vmem:[%s3748_s16 + $0x48] sm:$0xf] %v3104_v55  ;;  %1538 = vst [vmem:[%s3748_s16 + $0xc] sm:$0xf] %v3118_v56  ;;  %v3105_v62 = vpack.c.bf16 %v1171_v57, %v1171_v57  ;;  %v3341_v2 = vpop.f32.mrb[28].mxu1 }
 0x1ee   : > { %v3119_v63 = vpack.c.bf16 %v1459_v58, %v1459_v58  ;;  %1248 = vst [vmem:[%s3748_s16 + $0x8] sm:$0xf] %v3102_v59  ;;  %1541 = vst [vmem:[%s3748_s16 + $0x6c] sm:$0xf] %v3121_v60  ;;  %v1448_v3 = vmax.f32 %v3359_v0, 0.0  ;;  %v1395_v4 = vpop.f32.mrb[29].mxu0 }
 0x1ef   : > { %v3103_v1 = vpack.c.bf16 %v1169_v61, %v1169_v61  ;;  %1251 = vst [vmem:[%s3748_s16 + $0x68] sm:$0xf] %v3105_v62  ;;  %v1158_v5 = vmax.f32 %v3341_v2, 0.0  ;;  %v1105_v6 = vpop.f32.mrb[29].mxu1  ;;  %v1446_v7 = vmax.f32 %v1395_v4, 0.0  ;;  %v3360_v8 = vpop.f32.mrb[30].mxu0 }
 0x1f0   : > { %1539 = vst [vmem:[%s3748_s16 + $0x2c] sm:$0xf] %v3119_v63  ;;  %v1464_v9 = vmin.f32 %v1448_v3, 1.0  ;;  %v1156_v10 = vmax.f32 %v1105_v6, 0.0  ;;  %v3342_v11 = vpop.f32.mrb[30].mxu1  ;;  %v1449_v12 = vmax.f32 %v3360_v8, 0.0 }
 0x1f1   : > { %1249 = vst [vmem:[%s3748_s16 + $0x28] sm:$0xf] %v3103_v1  ;;  %v1398_v13 = vpop.f32.mrb[31].mxu0  ;;  %v1174_v14 = vmin.f32 %v1158_v5, 1.0  ;;  %v1462_v15 = vmin.f32 %v1446_v7, 1.0  ;;  %v1159_v16 = vmax.f32 %v3342_v11, 0.0 }
 0x1f2   : > { %v1108_v17 = vpop.f32.mrb[31].mxu1  ;;  %v1447_v18 = vmax.f32 %v1398_v13, 0.0  ;;  %v3124_v19 = vpack.c.bf16 %v1464_v9, %v1464_v9  ;;  %v1172_v20 = vmin.f32 %v1156_v10, 1.0  ;;  %v1465_v21 = vmin.f32 %v1449_v12, 1.0 }
 0x1f3   : > { %v1157_v22 = vmax.f32 %v1108_v17, 0.0  ;;  %v3108_v23 = vpack.c.bf16 %v1174_v14, %v1174_v14  ;;  %v3122_v24 = vpack.c.bf16 %v1462_v15, %v1462_v15  ;;  %v1175_v25 = vmin.f32 %v1159_v16, 1.0 }
 0x1f4   : > { %v1463_v26 = vmin.f32 %v1447_v18, 1.0  ;;  %1544 = vst [vmem:[%s3748_s16 + $0xcc] sm:$0xf] %v3124_v19  ;;  %v3106_v27 = vpack.c.bf16 %v1172_v20, %v1172_v20  ;;  %v3125_v28 = vpack.c.bf16 %v1465_v21, %v1465_v21  ;;  %v3363_v32 = vpop.f32.mrb[32].mxu0 }
 0x1f5   : > { %v1173_v29 = vmin.f32 %v1157_v22, 1.0  ;;  %1254 = vst [vmem:[%s3748_s16 + $0xc8] sm:$0xf] %v3108_v23  ;;  %1542 = vst [vmem:[%s3748_s16 + $0x8c] sm:$0xf] %v3122_v24  ;;  %v3109_v30 = vpack.c.bf16 %v1175_v25, %v1175_v25  ;;  %v3345_v34 = vpop.f32.mrb[32].mxu1 }
 0x1f6   : > { %v3123_v31 = vpack.c.bf16 %v1463_v26, %v1463_v26  ;;  %1252 = vst [vmem:[%s3748_s16 + $0x88] sm:$0xf] %v3106_v27  ;;  %1545 = vst [vmem:[%s3748_s16 + $0xec] sm:$0xf] %v3125_v28  ;;  %v1452_v35 = vmax.f32 %v3363_v32, 0.0  ;;  %v1411_v36 = vpop.f32.mrb[33].mxu0 }
 0x1f7   : > { %v3107_v33 = vpack.c.bf16 %v1173_v29, %v1173_v29  ;;  %1255 = vst [vmem:[%s3748_s16 + $0xe8] sm:$0xf] %v3109_v30  ;;  %v1162_v37 = vmax.f32 %v3345_v34, 0.0  ;;  %v1121_v38 = vpop.f32.mrb[33].mxu1  ;;  %v1450_v39 = vmax.f32 %v1411_v36, 0.0  ;;  %v3364_v40 = vpop.f32.mrb[34].mxu0 }
 0x1f8   : > { %1543 = vst [vmem:[%s3748_s16 + $0xac] sm:$0xf] %v3123_v31  ;;  %v1468_v41 = vmin.f32 %v1452_v35, 1.0  ;;  %v1160_v42 = vmax.f32 %v1121_v38, 0.0  ;;  %v3346_v43 = vpop.f32.mrb[34].mxu1  ;;  %v1453_v44 = vmax.f32 %v3364_v40, 0.0 }
 0x1f9   : > { %1253 = vst [vmem:[%s3748_s16 + $0xa8] sm:$0xf] %v3107_v33  ;;  %v1414_v45 = vpop.f32.mrb[35].mxu0  ;;  %v1178_v46 = vmin.f32 %v1162_v37, 1.0  ;;  %v1466_v47 = vmin.f32 %v1450_v39, 1.0  ;;  %v1163_v48 = vmax.f32 %v3346_v43, 0.0 }
 0x1fa   : > { %v1124_v49 = vpop.f32.mrb[35].mxu1  ;;  %v1451_v50 = vmax.f32 %v1414_v45, 0.0  ;;  %v3128_v51 = vpack.c.bf16 %v1468_v41, %v1468_v41  ;;  %v1176_v52 = vmin.f32 %v1160_v42, 1.0  ;;  %v1469_v53 = vmin.f32 %v1453_v44, 1.0 }
 0x1fb   : > { %v1161_v54 = vmax.f32 %v1124_v49, 0.0  ;;  %v3112_v55 = vpack.c.bf16 %v1178_v46, %v1178_v46  ;;  %v3126_v56 = vpack.c.bf16 %v1466_v47, %v1466_v47  ;;  %v1179_v57 = vmin.f32 %v1163_v48, 1.0 }
 0x1fc   : > { %v1467_v58 = vmin.f32 %v1451_v50, 1.0  ;;  %1548 = vst [vmem:[%s3748_s16 + $0x14c] sm:$0xf] %v3128_v51  ;;  %v3110_v59 = vpack.c.bf16 %v1176_v52, %v1176_v52  ;;  %v3129_v60 = vpack.c.bf16 %v1469_v53, %v1469_v53  ;;  %v3367_v0 = vpop.f32.mrb[36].mxu0 }
 0x1fd   : > { %v1177_v61 = vmin.f32 %v1161_v54, 1.0  ;;  %1258 = vst [vmem:[%s3748_s16 + $0x148] sm:$0xf] %v3112_v55  ;;  %1546 = vst [vmem:[%s3748_s16 + $0x10c] sm:$0xf] %v3126_v56  ;;  %v3113_v62 = vpack.c.bf16 %v1179_v57, %v1179_v57  ;;  %v3349_v2 = vpop.f32.mrb[36].mxu1 }
 0x1fe   : > { %v3127_v63 = vpack.c.bf16 %v1467_v58, %v1467_v58  ;;  %1256 = vst [vmem:[%s3748_s16 + $0x108] sm:$0xf] %v3110_v59  ;;  %1549 = vst [vmem:[%s3748_s16 + $0x16c] sm:$0xf] %v3129_v60  ;;  %v1456_v3 = vmax.f32 %v3367_v0, 0.0  ;;  %v1427_v4 = vpop.f32.mrb[37].mxu0 }
 0x1ff   : > { %v3111_v1 = vpack.c.bf16 %v1177_v61, %v1177_v61  ;;  %1259 = vst [vmem:[%s3748_s16 + $0x168] sm:$0xf] %v3113_v62  ;;  %v1166_v5 = vmax.f32 %v3349_v2, 0.0  ;;  %v1137_v6 = vpop.f32.mrb[37].mxu1  ;;  %v1454_v7 = vmax.f32 %v1427_v4, 0.0  ;;  %v3368_v8 = vpop.f32.mrb[38].mxu0 }
 0x200   : > { %1547 = vst [vmem:[%s3748_s16 + $0x12c] sm:$0xf] %v3127_v63  ;;  %v1472_v9 = vmin.f32 %v1456_v3, 1.0  ;;  %v1164_v10 = vmax.f32 %v1137_v6, 0.0  ;;  %v3350_v11 = vpop.f32.mrb[38].mxu1  ;;  %v1457_v12 = vmax.f32 %v3368_v8, 0.0 }
 0x201   : > { %1257 = vst [vmem:[%s3748_s16 + $0x128] sm:$0xf] %v3111_v1  ;;  %v1430_v13 = vpop.f32.mrb[39].mxu0  ;;  %v1182_v14 = vmin.f32 %v1166_v5, 1.0  ;;  %v1470_v15 = vmin.f32 %v1454_v7, 1.0  ;;  %v1167_v16 = vmax.f32 %v3350_v11, 0.0 }
 0x202   : > { %v1140_v17 = vpop.f32.mrb[39].mxu1  ;;  %v1455_v18 = vmax.f32 %v1430_v13, 0.0  ;;  %v3132_v19 = vpack.c.bf16 %v1472_v9, %v1472_v9  ;;  %v1180_v20 = vmin.f32 %v1164_v10, 1.0  ;;  %v1473_v21 = vmin.f32 %v1457_v12, 1.0 }
 0x203   : > { %v1165_v22 = vmax.f32 %v1140_v17, 0.0  ;;  %v3116_v23 = vpack.c.bf16 %v1182_v14, %v1182_v14  ;;  %v3130_v24 = vpack.c.bf16 %v1470_v15, %v1470_v15  ;;  %v1183_v25 = vmin.f32 %v1167_v16, 1.0 }
 0x204   : > { %v1471_v26 = vmin.f32 %v1455_v18, 1.0  ;;  %1552 = vst [vmem:[%s3748_s16 + $0x1cc] sm:$0xf] %v3132_v19  ;;  %v3114_v27 = vpack.c.bf16 %v1180_v20, %v1180_v20  ;;  %v3133_v28 = vpack.c.bf16 %v1473_v21, %v1473_v21  ;;  %v3391_v32 = vpop.f32.mrb[40].mxu0 }
 0x205   : > { %v1181_v29 = vmin.f32 %v1165_v22, 1.0  ;;  %1262 = vst [vmem:[%s3748_s16 + $0x1c8] sm:$0xf] %v3116_v23  ;;  %1550 = vst [vmem:[%s3748_s16 + $0x18c] sm:$0xf] %v3130_v24  ;;  %v3117_v30 = vpack.c.bf16 %v1183_v25, %v1183_v25  ;;  %v3373_v34 = vpop.f32.mrb[40].mxu1 }
 0x206   : > { %v3131_v31 = vpack.c.bf16 %v1471_v26, %v1471_v26  ;;  %1260 = vst [vmem:[%s3748_s16 + $0x188] sm:$0xf] %v3114_v27  ;;  %1553 = vst [vmem:[%s3748_s16 + $0x1ec] sm:$0xf] %v3133_v28  ;;  %v2024_v35 = vmax.f32 %v3391_v32, 0.0  ;;  %v1959_v36 = vpop.f32.mrb[41].mxu0 }
 0x207   : > { %v3115_v33 = vpack.c.bf16 %v1181_v29, %v1181_v29  ;;  %1263 = vst [vmem:[%s3748_s16 + $0x1e8] sm:$0xf] %v3117_v30  ;;  %v1734_v37 = vmax.f32 %v3373_v34, 0.0  ;;  %v1669_v38 = vpop.f32.mrb[41].mxu1  ;;  %v2022_v39 = vmax.f32 %v1959_v36, 0.0  ;;  %v3392_v40 = vpop.f32.mrb[42].mxu0 }
 0x208   : > { %1551 = vst [vmem:[%s3748_s16 + $0x1ac] sm:$0xf] %v3131_v31  ;;  %v2040_v41 = vmin.f32 %v2024_v35, 1.0  ;;  %v1732_v42 = vmax.f32 %v1669_v38, 0.0  ;;  %v3374_v43 = vpop.f32.mrb[42].mxu1  ;;  %v2025_v44 = vmax.f32 %v3392_v40, 0.0 }
 0x209   : > { %1261 = vst [vmem:[%s3748_s16 + $0x1a8] sm:$0xf] %v3115_v33  ;;  %v1962_v45 = vpop.f32.mrb[43].mxu0  ;;  %v1750_v46 = vmin.f32 %v1734_v37, 1.0  ;;  %v2038_v47 = vmin.f32 %v2022_v39, 1.0  ;;  %v1735_v48 = vmax.f32 %v3374_v43, 0.0 }
 0x20a   : > { %v1672_v49 = vpop.f32.mrb[43].mxu1  ;;  %v2023_v50 = vmax.f32 %v1962_v45, 0.0  ;;  %v3152_v51 = vpack.c.bf16 %v2040_v41, %v2040_v41  ;;  %v1748_v52 = vmin.f32 %v1732_v42, 1.0  ;;  %v2041_v53 = vmin.f32 %v2025_v44, 1.0 }
 0x20b   : > { %v1733_v54 = vmax.f32 %v1672_v49, 0.0  ;;  %v3136_v55 = vpack.c.bf16 %v1750_v46, %v1750_v46  ;;  %v3150_v56 = vpack.c.bf16 %v2038_v47, %v2038_v47  ;;  %v1751_v57 = vmin.f32 %v1735_v48, 1.0 }
 0x20c   : > { %v2039_v58 = vmin.f32 %v2023_v50, 1.0  ;;  %2120 = vst [vmem:[%s3748_s16 + $0x54] sm:$0xf] %v3152_v51  ;;  %v3134_v59 = vpack.c.bf16 %v1748_v52, %v1748_v52  ;;  %v3153_v60 = vpack.c.bf16 %v2041_v53, %v2041_v53  ;;  %v3395_v0 = vpop.f32.mrb[44].mxu0 }
 0x20d   : > { %v1749_v61 = vmin.f32 %v1733_v54, 1.0  ;;  %1830 = vst [vmem:[%s3748_s16 + $0x50] sm:$0xf] %v3136_v55  ;;  %2118 = vst [vmem:[%s3748_s16 + $0x14] sm:$0xf] %v3150_v56  ;;  %v3137_v62 = vpack.c.bf16 %v1751_v57, %v1751_v57  ;;  %v3377_v2 = vpop.f32.mrb[44].mxu1 }
 0x20e   : > { %v3151_v63 = vpack.c.bf16 %v2039_v58, %v2039_v58  ;;  %1828 = vst [vmem:[%s3748_s16 + $0x10] sm:$0xf] %v3134_v59  ;;  %2121 = vst [vmem:[%s3748_s16 + $0x74] sm:$0xf] %v3153_v60  ;;  %v2028_v3 = vmax.f32 %v3395_v0, 0.0  ;;  %v1975_v4 = vpop.f32.mrb[45].mxu0 }
 0x20f   : > { %v3135_v1 = vpack.c.bf16 %v1749_v61, %v1749_v61  ;;  %1831 = vst [vmem:[%s3748_s16 + $0x70] sm:$0xf] %v3137_v62  ;;  %v1738_v5 = vmax.f32 %v3377_v2, 0.0  ;;  %v1685_v6 = vpop.f32.mrb[45].mxu1  ;;  %v2026_v7 = vmax.f32 %v1975_v4, 0.0  ;;  %v3396_v8 = vpop.f32.mrb[46].mxu0 }
 0x210   : > { %2119 = vst [vmem:[%s3748_s16 + $0x34] sm:$0xf] %v3151_v63  ;;  %v2044_v9 = vmin.f32 %v2028_v3, 1.0  ;;  %v1736_v10 = vmax.f32 %v1685_v6, 0.0  ;;  %v3378_v11 = vpop.f32.mrb[46].mxu1  ;;  %v2029_v12 = vmax.f32 %v3396_v8, 0.0 }
 0x211   : > { %1829 = vst [vmem:[%s3748_s16 + $0x30] sm:$0xf] %v3135_v1  ;;  %v1978_v13 = vpop.f32.mrb[47].mxu0  ;;  %v1754_v14 = vmin.f32 %v1738_v5, 1.0  ;;  %v2042_v15 = vmin.f32 %v2026_v7, 1.0  ;;  %v1739_v16 = vmax.f32 %v3378_v11, 0.0 }
 0x212   : > { %v1688_v17 = vpop.f32.mrb[47].mxu1  ;;  %v2027_v18 = vmax.f32 %v1978_v13, 0.0  ;;  %v3156_v19 = vpack.c.bf16 %v2044_v9, %v2044_v9  ;;  %v1752_v20 = vmin.f32 %v1736_v10, 1.0  ;;  %v2045_v21 = vmin.f32 %v2029_v12, 1.0 }
 0x213   : > { %v1737_v22 = vmax.f32 %v1688_v17, 0.0  ;;  %v3140_v23 = vpack.c.bf16 %v1754_v14, %v1754_v14  ;;  %v3154_v24 = vpack.c.bf16 %v2042_v15, %v2042_v15  ;;  %v1755_v25 = vmin.f32 %v1739_v16, 1.0 }
 0x214   : > { %v2043_v26 = vmin.f32 %v2027_v18, 1.0  ;;  %2124 = vst [vmem:[%s3748_s16 + $0xd4] sm:$0xf] %v3156_v19  ;;  %v3138_v27 = vpack.c.bf16 %v1752_v20, %v1752_v20  ;;  %v3157_v28 = vpack.c.bf16 %v2045_v21, %v2045_v21  ;;  %v3399_v32 = vpop.f32.mrb[48].mxu0 }
 0x215   : > { %v1753_v29 = vmin.f32 %v1737_v22, 1.0  ;;  %1834 = vst [vmem:[%s3748_s16 + $0xd0] sm:$0xf] %v3140_v23  ;;  %2122 = vst [vmem:[%s3748_s16 + $0x94] sm:$0xf] %v3154_v24  ;;  %v3141_v30 = vpack.c.bf16 %v1755_v25, %v1755_v25  ;;  %v3381_v34 = vpop.f32.mrb[48].mxu1 }
 0x216   : > { %v3155_v31 = vpack.c.bf16 %v2043_v26, %v2043_v26  ;;  %1832 = vst [vmem:[%s3748_s16 + $0x90] sm:$0xf] %v3138_v27  ;;  %2125 = vst [vmem:[%s3748_s16 + $0xf4] sm:$0xf] %v3157_v28  ;;  %v2032_v35 = vmax.f32 %v3399_v32, 0.0  ;;  %v1991_v36 = vpop.f32.mrb[49].mxu0 }
 0x217   : > { %v3139_v33 = vpack.c.bf16 %v1753_v29, %v1753_v29  ;;  %1835 = vst [vmem:[%s3748_s16 + $0xf0] sm:$0xf] %v3141_v30  ;;  %v1742_v37 = vmax.f32 %v3381_v34, 0.0  ;;  %v1701_v38 = vpop.f32.mrb[49].mxu1  ;;  %v2030_v39 = vmax.f32 %v1991_v36, 0.0  ;;  %v3400_v40 = vpop.f32.mrb[50].mxu0 }
 0x218   : > { %2123 = vst [vmem:[%s3748_s16 + $0xb4] sm:$0xf] %v3155_v31  ;;  %v2048_v41 = vmin.f32 %v2032_v35, 1.0  ;;  %v1740_v42 = vmax.f32 %v1701_v38, 0.0  ;;  %v3382_v43 = vpop.f32.mrb[50].mxu1  ;;  %v2033_v44 = vmax.f32 %v3400_v40, 0.0 }
 0x219   : > { %1833 = vst [vmem:[%s3748_s16 + $0xb0] sm:$0xf] %v3139_v33  ;;  %v1994_v45 = vpop.f32.mrb[51].mxu0  ;;  %v1758_v46 = vmin.f32 %v1742_v37, 1.0  ;;  %v2046_v47 = vmin.f32 %v2030_v39, 1.0  ;;  %v1743_v48 = vmax.f32 %v3382_v43, 0.0 }
 0x21a   : > { %v1704_v49 = vpop.f32.mrb[51].mxu1  ;;  %v2031_v50 = vmax.f32 %v1994_v45, 0.0  ;;  %v3160_v51 = vpack.c.bf16 %v2048_v41, %v2048_v41  ;;  %v1756_v52 = vmin.f32 %v1740_v42, 1.0  ;;  %v2049_v53 = vmin.f32 %v2033_v44, 1.0 }
 0x21b   : > { %v1741_v54 = vmax.f32 %v1704_v49, 0.0  ;;  %v3144_v55 = vpack.c.bf16 %v1758_v46, %v1758_v46  ;;  %v3158_v56 = vpack.c.bf16 %v2046_v47, %v2046_v47  ;;  %v1759_v57 = vmin.f32 %v1743_v48, 1.0 }
 0x21c   : > { %v2047_v58 = vmin.f32 %v2031_v50, 1.0  ;;  %2128 = vst [vmem:[%s3748_s16 + $0x154] sm:$0xf] %v3160_v51  ;;  %v3142_v59 = vpack.c.bf16 %v1756_v52, %v1756_v52  ;;  %v3161_v60 = vpack.c.bf16 %v2049_v53, %v2049_v53  ;;  %v3403_v0 = vpop.f32.mrb[52].mxu0 }
 0x21d   : > { %v1757_v61 = vmin.f32 %v1741_v54, 1.0  ;;  %1838 = vst [vmem:[%s3748_s16 + $0x150] sm:$0xf] %v3144_v55  ;;  %2126 = vst [vmem:[%s3748_s16 + $0x114] sm:$0xf] %v3158_v56  ;;  %v3145_v62 = vpack.c.bf16 %v1759_v57, %v1759_v57  ;;  %v3385_v2 = vpop.f32.mrb[52].mxu1 }
 0x21e   : > { %v3159_v63 = vpack.c.bf16 %v2047_v58, %v2047_v58  ;;  %1836 = vst [vmem:[%s3748_s16 + $0x110] sm:$0xf] %v3142_v59  ;;  %2129 = vst [vmem:[%s3748_s16 + $0x174] sm:$0xf] %v3161_v60  ;;  %v2036_v3 = vmax.f32 %v3403_v0, 0.0  ;;  %v2007_v4 = vpop.f32.mrb[53].mxu0 }
 0x21f   : > { %v3143_v1 = vpack.c.bf16 %v1757_v61, %v1757_v61  ;;  %1839 = vst [vmem:[%s3748_s16 + $0x170] sm:$0xf] %v3145_v62  ;;  %v1746_v5 = vmax.f32 %v3385_v2, 0.0  ;;  %v1717_v6 = vpop.f32.mrb[53].mxu1  ;;  %v2034_v7 = vmax.f32 %v2007_v4, 0.0  ;;  %v3404_v8 = vpop.f32.mrb[54].mxu0 }
 0x220   : > { %2127 = vst [vmem:[%s3748_s16 + $0x134] sm:$0xf] %v3159_v63  ;;  %v2052_v9 = vmin.f32 %v2036_v3, 1.0  ;;  %v1744_v10 = vmax.f32 %v1717_v6, 0.0  ;;  %v3386_v11 = vpop.f32.mrb[54].mxu1  ;;  %v2037_v12 = vmax.f32 %v3404_v8, 0.0 }
 0x221   : > { %1837 = vst [vmem:[%s3748_s16 + $0x130] sm:$0xf] %v3143_v1  ;;  %v2010_v13 = vpop.f32.mrb[55].mxu0  ;;  %v1762_v14 = vmin.f32 %v1746_v5, 1.0  ;;  %v2050_v15 = vmin.f32 %v2034_v7, 1.0  ;;  %v1747_v16 = vmax.f32 %v3386_v11, 0.0 }
 0x222   : > { %v1720_v17 = vpop.f32.mrb[55].mxu1  ;;  %v2035_v18 = vmax.f32 %v2010_v13, 0.0  ;;  %v3164_v19 = vpack.c.bf16 %v2052_v9, %v2052_v9  ;;  %v1760_v20 = vmin.f32 %v1744_v10, 1.0  ;;  %v2053_v21 = vmin.f32 %v2037_v12, 1.0 }
 0x223   : > { %v1745_v22 = vmax.f32 %v1720_v17, 0.0  ;;  %v3148_v23 = vpack.c.bf16 %v1762_v14, %v1762_v14  ;;  %v3162_v24 = vpack.c.bf16 %v2050_v15, %v2050_v15  ;;  %v1763_v25 = vmin.f32 %v1747_v16, 1.0 }
 0x224   : > { %v2051_v26 = vmin.f32 %v2035_v18, 1.0  ;;  %2132 = vst [vmem:[%s3748_s16 + $0x1d4] sm:$0xf] %v3164_v19  ;;  %v3146_v27 = vpack.c.bf16 %v1760_v20, %v1760_v20  ;;  %v3165_v28 = vpack.c.bf16 %v2053_v21, %v2053_v21  ;;  %v3427_v32 = vpop.f32.mrb[56].mxu0 }
 0x225   : > { %v1761_v29 = vmin.f32 %v1745_v22, 1.0  ;;  %1842 = vst [vmem:[%s3748_s16 + $0x1d0] sm:$0xf] %v3148_v23  ;;  %2130 = vst [vmem:[%s3748_s16 + $0x194] sm:$0xf] %v3162_v24  ;;  %v3149_v30 = vpack.c.bf16 %v1763_v25, %v1763_v25  ;;  %v3409_v34 = vpop.f32.mrb[56].mxu1 }
 0x226   : > { %v3163_v31 = vpack.c.bf16 %v2051_v26, %v2051_v26  ;;  %1840 = vst [vmem:[%s3748_s16 + $0x190] sm:$0xf] %v3146_v27  ;;  %2133 = vst [vmem:[%s3748_s16 + $0x1f4] sm:$0xf] %v3165_v28  ;;  %v2604_v35 = vmax.f32 %v3427_v32, 0.0  ;;  %v2539_v36 = vpop.f32.mrb[57].mxu0 }
 0x227   : > { %v3147_v33 = vpack.c.bf16 %v1761_v29, %v1761_v29  ;;  %1843 = vst [vmem:[%s3748_s16 + $0x1f0] sm:$0xf] %v3149_v30  ;;  %v2314_v37 = vmax.f32 %v3409_v34, 0.0  ;;  %v2249_v38 = vpop.f32.mrb[57].mxu1  ;;  %v2602_v39 = vmax.f32 %v2539_v36, 0.0  ;;  %v3428_v40 = vpop.f32.mrb[58].mxu0 }
 0x228   : > { %2131 = vst [vmem:[%s3748_s16 + $0x1b4] sm:$0xf] %v3163_v31  ;;  %v2620_v41 = vmin.f32 %v2604_v35, 1.0  ;;  %v2312_v42 = vmax.f32 %v2249_v38, 0.0  ;;  %v3410_v43 = vpop.f32.mrb[58].mxu1  ;;  %v2605_v44 = vmax.f32 %v3428_v40, 0.0 }
 0x229   : > { %1841 = vst [vmem:[%s3748_s16 + $0x1b0] sm:$0xf] %v3147_v33  ;;  %v2542_v45 = vpop.f32.mrb[59].mxu0  ;;  %v2330_v46 = vmin.f32 %v2314_v37, 1.0  ;;  %v2618_v47 = vmin.f32 %v2602_v39, 1.0  ;;  %v2315_v48 = vmax.f32 %v3410_v43, 0.0 }
 0x22a   : > { %v2252_v49 = vpop.f32.mrb[59].mxu1  ;;  %v2603_v50 = vmax.f32 %v2542_v45, 0.0  ;;  %v3184_v51 = vpack.c.bf16 %v2620_v41, %v2620_v41  ;;  %v2328_v52 = vmin.f32 %v2312_v42, 1.0  ;;  %v2621_v53 = vmin.f32 %v2605_v44, 1.0 }
 0x22b   : > { %v2313_v54 = vmax.f32 %v2252_v49, 0.0  ;;  %v3168_v55 = vpack.c.bf16 %v2330_v46, %v2330_v46  ;;  %v3182_v56 = vpack.c.bf16 %v2618_v47, %v2618_v47  ;;  %v2331_v57 = vmin.f32 %v2315_v48, 1.0 }
 0x22c   : > { %v2619_v58 = vmin.f32 %v2603_v50, 1.0  ;;  %2700 = vst [vmem:[%s3748_s16 + $0x5c] sm:$0xf] %v3184_v51  ;;  %v3166_v59 = vpack.c.bf16 %v2328_v52, %v2328_v52  ;;  %v3185_v60 = vpack.c.bf16 %v2621_v53, %v2621_v53  ;;  %v3431_v0 = vpop.f32.mrb[60].mxu0 }
 0x22d   : > { %v2329_v61 = vmin.f32 %v2313_v54, 1.0  ;;  %2410 = vst [vmem:[%s3748_s16 + $0x58] sm:$0xf] %v3168_v55  ;;  %2698 = vst [vmem:[%s3748_s16 + $0x1c] sm:$0xf] %v3182_v56  ;;  %v3169_v62 = vpack.c.bf16 %v2331_v57, %v2331_v57  ;;  %v3413_v2 = vpop.f32.mrb[60].mxu1 }
 0x22e   : > { %v3183_v63 = vpack.c.bf16 %v2619_v58, %v2619_v58  ;;  %2408 = vst [vmem:[%s3748_s16 + $0x18] sm:$0xf] %v3166_v59  ;;  %2701 = vst [vmem:[%s3748_s16 + $0x7c] sm:$0xf] %v3185_v60  ;;  %v2608_v3 = vmax.f32 %v3431_v0, 0.0  ;;  %v2555_v4 = vpop.f32.mrb[61].mxu0 }
 0x22f   : > { %v3167_v1 = vpack.c.bf16 %v2329_v61, %v2329_v61  ;;  %2411 = vst [vmem:[%s3748_s16 + $0x78] sm:$0xf] %v3169_v62  ;;  %v2318_v5 = vmax.f32 %v3413_v2, 0.0  ;;  %v2265_v6 = vpop.f32.mrb[61].mxu1  ;;  %v2606_v7 = vmax.f32 %v2555_v4, 0.0  ;;  %v3432_v8 = vpop.f32.mrb[62].mxu0 }
 0x230   : > { %2699 = vst [vmem:[%s3748_s16 + $0x3c] sm:$0xf] %v3183_v63  ;;  %v2624_v9 = vmin.f32 %v2608_v3, 1.0  ;;  %v2316_v10 = vmax.f32 %v2265_v6, 0.0  ;;  %v3414_v11 = vpop.f32.mrb[62].mxu1  ;;  %v2609_v12 = vmax.f32 %v3432_v8, 0.0 }
 0x231   : > { %2409 = vst [vmem:[%s3748_s16 + $0x38] sm:$0xf] %v3167_v1  ;;  %v2558_v13 = vpop.f32.mrb[63].mxu0  ;;  %v2334_v14 = vmin.f32 %v2318_v5, 1.0  ;;  %v2622_v15 = vmin.f32 %v2606_v7, 1.0  ;;  %v2319_v16 = vmax.f32 %v3414_v11, 0.0 }
 0x232   : > { %v2268_v17 = vpop.f32.mrb[63].mxu1  ;;  %v2607_v18 = vmax.f32 %v2558_v13, 0.0  ;;  %v3188_v19 = vpack.c.bf16 %v2624_v9, %v2624_v9  ;;  %v2332_v20 = vmin.f32 %v2316_v10, 1.0  ;;  %v2625_v21 = vmin.f32 %v2609_v12, 1.0 }
 0x233   : > { %v2317_v22 = vmax.f32 %v2268_v17, 0.0  ;;  %v3172_v23 = vpack.c.bf16 %v2334_v14, %v2334_v14  ;;  %v3186_v24 = vpack.c.bf16 %v2622_v15, %v2622_v15  ;;  %v2335_v25 = vmin.f32 %v2319_v16, 1.0 }
 0x234   : > { %v2623_v26 = vmin.f32 %v2607_v18, 1.0  ;;  %2704 = vst [vmem:[%s3748_s16 + $0xdc] sm:$0xf] %v3188_v19  ;;  %v3170_v27 = vpack.c.bf16 %v2332_v20, %v2332_v20  ;;  %v3189_v28 = vpack.c.bf16 %v2625_v21, %v2625_v21  ;;  %v3435_v32 = vpop.f32.mrb[64].mxu0 }
 0x235   : > { %v2333_v29 = vmin.f32 %v2317_v22, 1.0  ;;  %2414 = vst [vmem:[%s3748_s16 + $0xd8] sm:$0xf] %v3172_v23  ;;  %2702 = vst [vmem:[%s3748_s16 + $0x9c] sm:$0xf] %v3186_v24  ;;  %v3173_v30 = vpack.c.bf16 %v2335_v25, %v2335_v25  ;;  %v3417_v34 = vpop.f32.mrb[64].mxu1 }
 0x236   : > { %v3187_v31 = vpack.c.bf16 %v2623_v26, %v2623_v26  ;;  %2412 = vst [vmem:[%s3748_s16 + $0x98] sm:$0xf] %v3170_v27  ;;  %2705 = vst [vmem:[%s3748_s16 + $0xfc] sm:$0xf] %v3189_v28  ;;  %v2612_v35 = vmax.f32 %v3435_v32, 0.0  ;;  %v2571_v36 = vpop.f32.mrb[65].mxu0 }
 0x237   : > { %v3171_v33 = vpack.c.bf16 %v2333_v29, %v2333_v29  ;;  %2415 = vst [vmem:[%s3748_s16 + $0xf8] sm:$0xf] %v3173_v30  ;;  %v2322_v37 = vmax.f32 %v3417_v34, 0.0  ;;  %v2281_v38 = vpop.f32.mrb[65].mxu1  ;;  %v2610_v39 = vmax.f32 %v2571_v36, 0.0  ;;  %v3436_v40 = vpop.f32.mrb[66].mxu0 }
 0x238   : > { %2703 = vst [vmem:[%s3748_s16 + $0xbc] sm:$0xf] %v3187_v31  ;;  %v2628_v41 = vmin.f32 %v2612_v35, 1.0  ;;  %v2320_v42 = vmax.f32 %v2281_v38, 0.0  ;;  %v3418_v43 = vpop.f32.mrb[66].mxu1  ;;  %v2613_v44 = vmax.f32 %v3436_v40, 0.0 }
 0x239   : > { %2413 = vst [vmem:[%s3748_s16 + $0xb8] sm:$0xf] %v3171_v33  ;;  %v2574_v45 = vpop.f32.mrb[67].mxu0  ;;  %v2338_v46 = vmin.f32 %v2322_v37, 1.0  ;;  %v2626_v47 = vmin.f32 %v2610_v39, 1.0  ;;  %v2323_v48 = vmax.f32 %v3418_v43, 0.0 }
 0x23a   : > { %v2284_v49 = vpop.f32.mrb[67].mxu1  ;;  %v2611_v50 = vmax.f32 %v2574_v45, 0.0  ;;  %v3192_v51 = vpack.c.bf16 %v2628_v41, %v2628_v41  ;;  %v2336_v52 = vmin.f32 %v2320_v42, 1.0  ;;  %v2629_v53 = vmin.f32 %v2613_v44, 1.0 }
 0x23b   : > { %v2321_v54 = vmax.f32 %v2284_v49, 0.0  ;;  %v3176_v55 = vpack.c.bf16 %v2338_v46, %v2338_v46  ;;  %v3190_v56 = vpack.c.bf16 %v2626_v47, %v2626_v47  ;;  %v2339_v57 = vmin.f32 %v2323_v48, 1.0 }
 0x23c   : > { %v2627_v58 = vmin.f32 %v2611_v50, 1.0  ;;  %2708 = vst [vmem:[%s3748_s16 + $0x15c] sm:$0xf] %v3192_v51  ;;  %v3174_v59 = vpack.c.bf16 %v2336_v52, %v2336_v52  ;;  %v3193_v60 = vpack.c.bf16 %v2629_v53, %v2629_v53  ;;  %v3439_v0 = vpop.f32.mrb[68].mxu0 }
 0x23d   : > { %v2337_v61 = vmin.f32 %v2321_v54, 1.0  ;;  %2418 = vst [vmem:[%s3748_s16 + $0x158] sm:$0xf] %v3176_v55  ;;  %2706 = vst [vmem:[%s3748_s16 + $0x11c] sm:$0xf] %v3190_v56  ;;  %v3177_v62 = vpack.c.bf16 %v2339_v57, %v2339_v57  ;;  %v3421_v2 = vpop.f32.mrb[68].mxu1 }
 0x23e   : > { %v3191_v63 = vpack.c.bf16 %v2627_v58, %v2627_v58  ;;  %2416 = vst [vmem:[%s3748_s16 + $0x118] sm:$0xf] %v3174_v59  ;;  %2709 = vst [vmem:[%s3748_s16 + $0x17c] sm:$0xf] %v3193_v60  ;;  %v2616_v3 = vmax.f32 %v3439_v0, 0.0  ;;  %v2587_v4 = vpop.f32.mrb[69].mxu0 }
 0x23f   : > { %v3175_v1 = vpack.c.bf16 %v2337_v61, %v2337_v61  ;;  %2419 = vst [vmem:[%s3748_s16 + $0x178] sm:$0xf] %v3177_v62  ;;  %v2326_v5 = vmax.f32 %v3421_v2, 0.0  ;;  %v2297_v6 = vpop.f32.mrb[69].mxu1  ;;  %v2614_v7 = vmax.f32 %v2587_v4, 0.0  ;;  %v3440_v8 = vpop.f32.mrb[70].mxu0 }
 0x240   : > { %2707 = vst [vmem:[%s3748_s16 + $0x13c] sm:$0xf] %v3191_v63  ;;  %v2632_v9 = vmin.f32 %v2616_v3, 1.0  ;;  %v2324_v10 = vmax.f32 %v2297_v6, 0.0  ;;  %v3422_v11 = vpop.f32.mrb[70].mxu1  ;;  %v2617_v12 = vmax.f32 %v3440_v8, 0.0 }
 0x241   : > { %2417 = vst [vmem:[%s3748_s16 + $0x138] sm:$0xf] %v3175_v1  ;;  %v2590_v13 = vpop.f32.mrb[71].mxu0  ;;  %v2342_v14 = vmin.f32 %v2326_v5, 1.0  ;;  %v2630_v15 = vmin.f32 %v2614_v7, 1.0  ;;  %v2327_v16 = vmax.f32 %v3422_v11, 0.0 }
 0x242   : > { %v2300_v17 = vpop.f32.mrb[71].mxu1  ;;  %v2615_v18 = vmax.f32 %v2590_v13, 0.0  ;;  %v3196_v19 = vpack.c.bf16 %v2632_v9, %v2632_v9  ;;  %v2340_v20 = vmin.f32 %v2324_v10, 1.0  ;;  %v2633_v21 = vmin.f32 %v2617_v12, 1.0 }
 0x243   : > { %v2325_v22 = vmax.f32 %v2300_v17, 0.0  ;;  %v3180_v23 = vpack.c.bf16 %v2342_v14, %v2342_v14  ;;  %v3194_v24 = vpack.c.bf16 %v2630_v15, %v2630_v15  ;;  %v2343_v25 = vmin.f32 %v2327_v16, 1.0 }
 0x244   : > { %v2631_v26 = vmin.f32 %v2615_v18, 1.0  ;;  %2712 = vst [vmem:[%s3748_s16 + $0x1dc] sm:$0xf] %v3196_v19  ;;  %v3178_v27 = vpack.c.bf16 %v2340_v20, %v2340_v20  ;;  %v3197_v28 = vpack.c.bf16 %v2633_v21, %v2633_v21 }
 0x245   : > { %v2341_v29 = vmin.f32 %v2325_v22, 1.0  ;;  %2422 = vst [vmem:[%s3748_s16 + $0x1d8] sm:$0xf] %v3180_v23  ;;  %2710 = vst [vmem:[%s3748_s16 + $0x19c] sm:$0xf] %v3194_v24  ;;  %v3181_v30 = vpack.c.bf16 %v2343_v25, %v2343_v25 }
 0x246   : > { %v3195_v31 = vpack.c.bf16 %v2631_v26, %v2631_v26  ;;  %2420 = vst [vmem:[%s3748_s16 + $0x198] sm:$0xf] %v3178_v27  ;;  %2713 = vst [vmem:[%s3748_s16 + $0x1fc] sm:$0xf] %v3197_v28 }
 0x247   : > { %v3179_v32 = vpack.c.bf16 %v2341_v29, %v2341_v29  ;;  %2423 = vst [vmem:[%s3748_s16 + $0x1f8] sm:$0xf] %v3181_v30 }
 0x248   : > { %2711 = vst [vmem:[%s3748_s16 + $0x1bc] sm:$0xf] %v3195_v31 }
 0x249   : > { %2421 = vst [vmem:[%s3748_s16 + $0x1b8] sm:$0xf] %v3179_v32 }
 0x24a PF: > { %s13_s12 = sadd.s32 1, %s3530_s12  }
 0x24b   : > { %p10_p4 = scmp.ge.s32.totalorder %s13_s12, 6  }
 0x24d   :  { %12 = sbr.rel (!%p10_p4) target bundleno = 1 (0x1), region = 65 }

</bundles_post_ra>
